<compile_context>
chip_gen: v5e
topology: v5e:2x2
jax: 0.10.0
libtpu: 0.0.40
codegen_flags: <defaults>
</compile_context>

<pallas_src>
import jax
import jax.numpy as jnp
from jax import lax
from jax.experimental import pallas as pl
from jax.experimental.pallas import tpu as pltpu

_EPS = 1e-5


def _round_up(n, m):
    return ((n + m - 1) // m) * m


# ---------------------------------------------------------------------------
# in-kernel helpers (traced inline into the fused kernel body)
# ---------------------------------------------------------------------------
def _shift_cols(x, off):
    """y[:, j] = x[:, j + off], zeros outside [0, T).  `off` is a static int."""
    if off == 0:
        return x
    t = x.shape[-1]
    rolled = pltpu.roll(x, shift=(-off) % t, axis=1)          # XLU lane rotate
    j = lax.broadcasted_iota(jnp.int32, x.shape, 1)
    return jnp.where((j + off >= 0) & (j + off < t), rolled, 0.0)


def _im2col(x, kw):
    """(C, T) -> (kw*C, T): row k*C + c holds x[c, t + k - pad] ('same' zero pad)."""
    if kw == 1:
        return x
    pad = (kw - 1) // 2
    return jnp.concatenate([_shift_cols(x, k - pad) for k in range(kw)], axis=0)


def _layernorm_cols(y, gamma, beta, eps=_EPS):
    """LayerNorm over axis 0 (channels) per time column; two-pass, f32."""
    c = y.shape[0]
    mean = jnp.sum(y, axis=0, keepdims=True) * (1.0 / c)
    d = y - mean
    var = jnp.sum(d * d, axis=0, keepdims=True) * (1.0 / c)
    return d * lax.rsqrt(var + eps) * gamma + beta


def _conv1d_block(x, w, b, gamma, beta, kw):
    """Conv1d(stride=1, 'same') + bias + ReLU + LayerNorm(out_channels)."""
    acc = jnp.dot(w, _im2col(x, kw), preferred_element_type=jnp.float32)
    return _layernorm_cols(jnp.maximum(acc + b, 0.0), gamma, beta)


def _make_fused_kernel(kw_pose, kw_key, kw_tcw, kw_tds):
    def kernel(pose_ref, m_ref, key_ref,
               pcw, pcb, pcg, pcbt,
               kcw, kcb, kcg, kcbt,
               tcw, tcb, tcg, tcbt,
               dcw, dcb, dcg, dcbt,
               f1w, f1b, f2w, f2b, fcg, fcbt,
               o_ref):
        # 1) F.interpolate(pose, n_time, 'linear', align_corners=True) as a matmul.
        pose_i = jnp.dot(pose_ref[...], m_ref[...], preferred_element_type=jnp.float32)
        # 2) pose / key Conv1dBlocks.
        pose_f = _conv1d_block(pose_i, pcw[...], pcb[...], pcg[...], pcbt[...], kw_pose)
        key_f = _conv1d_block(key_ref[...], kcw[...], kcb[...], kcg[...], kcbt[...], kw_key)
        # 3) fused = pose_f + key_f, then the TcwEncoder input Conv1dBlock.
        x = _conv1d_block(pose_f + key_f, tcw[...], tcb[...], tcg[...], tcbt[...], kw_tcw)
        # 4) TDSConv2dBlock: block-diagonal (kron over width) weight -> one MXU call.
        conv = jnp.dot(dcw[...], _im2col(x, kw_tds), preferred_element_type=jnp.float32)
        y = jnp.maximum(conv + dcb[...], 0.0) + x             # ReLU + residual (f32)
        x = _layernorm_cols(y, dcg[...], dcbt[...])
        # 5) TDSFullyConnectedBlock: Linear -> ReLU -> Linear + residual + LN.
        h = jnp.maximum(
            jnp.dot(f1w[...], x, preferred_element_type=jnp.float32) + f1b[...], 0.0)
        y = jnp.dot(f2w[...], h, preferred_element_type=jnp.float32) + f2b[...] + x
        o_ref[...] = _layernorm_cols(y, fcg[...], fcbt[...]).astype(o_ref.dtype)

    return kernel


# ---------------------------------------------------------------------------
# host-side parameter / input preparation
# ---------------------------------------------------------------------------
def _col(v):
    return v.astype(jnp.float32)[:, None]


def _pad_channels(x, c_pad):
    c = x.shape[1]
    return x if c == c_pad else jnp.pad(x, ((0, 0), (0, c_pad - c), (0, 0)))


def _prep_conv_weight(w, cin_pad):
    """(Cout, Cin, kw) -> (Cout, kw*cin_pad), column order matches _im2col rows."""
    cout, cin, kw = w.shape
    wt = jnp.transpose(w, (0, 2, 1))                          # (Cout, kw, Cin)
    if cin_pad != cin:
        wt = jnp.pad(wt, ((0, 0), (0, 0), (0, cin_pad - cin)))
    return wt.reshape(cout, kw * cin_pad).astype(jnp.float32)


def _prep_tds_conv_weight(w, width):
    """(channels, channels, kw) -> block-diagonal (C, kw*C), C = channels*width."""
    kw = w.shape[-1]
    eye = jnp.eye(width, dtype=jnp.float32)
    return jnp.concatenate(
        [jnp.kron(w[:, :, k].astype(jnp.float32), eye) for k in range(kw)], axis=1)


def _interp_matrix(n_in, n_out, n_in_pad):
    """(n_in_pad, n_out): x_pad @ m == F.interpolate(x, n_out, 'linear', align_corners=True)."""
    if n_out == n_in:
        m = jnp.eye(n_in, dtype=jnp.float32)
    else:
        pos = jnp.arange(n_out, dtype=jnp.float32) * ((n_in - 1) / (n_out - 1))
        lo = jnp.clip(jnp.floor(pos).astype(jnp.int32), 0, n_in - 2)
        frac = pos - lo.astype(jnp.float32)
        m = (jax.nn.one_hot(lo, n_in, dtype=jnp.float32) * (1.0 - frac)[:, None]
             + jax.nn.one_hot(lo + 1, n_in, dtype=jnp.float32) * frac[:, None]).T
    if n_in_pad != n_in:
        m = jnp.pad(m, ((0, n_in_pad - n_in), (0, 0)))
    return m


# ---------------------------------------------------------------------------
# full forward: ONE fused pallas_call
# ---------------------------------------------------------------------------
@jax.jit
def piano_kpm_forward(params, pose, key_feats):
    """PianoKPMNetwork_multimodal.forward (inference; Dropout is a no-op)."""
    B, pose_cin, t_pose = pose.shape
    bk, key_cin, T = key_feats.shape
    assert bk == B
    n_time = round(t_pose / 60 * 1024)
    assert n_time == T, (n_time, T)   # key stream must match interpolated pose length

    pcw, pcb, pcg, pcbt = params["pose_conv"]
    kcw, kcb, kcg, kcbt = params["key_conv"]
    tcw_w, tcw_b, tcw_g, tcw_bt = params["tcw_conv"]
    dcw, dcb, dcg, dcbt = params["tds_conv"]
    f1w, f1b, f2w, f2b, fcg, fcbt = params["tds_fc"]

    feat_mid, _, kw_pose = pcw.shape
    kw_key = kcw.shape[-1]
    C, _, kw_tcw = tcw_w.shape
    channels, _, kw_tds = dcw.shape
    assert C % channels == 0
    width = C // channels
    # TODO(synk): only the stride=1 / 'same' odd-kernel Conv1dBlock path this network
    # uses is implemented (general stride/padding and norm_type='batch' are not).
    assert kw_pose % 2 == 1 and kw_key % 2 == 1 and kw_tcw % 2 == 1 and kw_tds % 2 == 1

    # Sublane-align the im2col pieces: zero-pad input channels to a multiple of 8
    # (zeros in x and in the matching weight columns -> result unchanged).
    cpp = _round_up(pose_cin, 8)
    cpk = _round_up(key_cin, 8)
    t_pose_pad = _round_up(t_pose, 128)       # lane-align the interpolation matmul

    pose_pad = _pad_channels(pose.astype(jnp.float32), cpp)
    pose_pad = jnp.pad(pose_pad, ((0, 0), (0, 0), (0, t_pose_pad - t_pose)))
    key_pad = _pad_channels(key_feats.astype(jnp.float32), cpk)
    m = _interp_matrix(t_pose, n_time, t_pose_pad)

    pcw2 = _prep_conv_weight(pcw, cpp)
    kcw2 = _prep_conv_weight(kcw, cpk)
    tcw2 = _prep_conv_weight(tcw_w, feat_mid)
    dcw2 = _prep_tds_conv_weight(dcw, width)
    dcb2 = jnp.repeat(dcb.astype(jnp.float32), width)         # bias per (co*width + wi) row

    def bcast(r, c):
        return pl.BlockSpec((r, c), lambda b: (0, 0))

    return pl.pallas_call(
        _make_fused_kernel(kw_pose, kw_key, kw_tcw, kw_tds),
        out_shape=jax.ShapeDtypeStruct((B, C, T), jnp.float32),
        grid=(B,),
        in_specs=[
            pl.BlockSpec((None, cpp, t_pose_pad), lambda b: (b, 0, 0)),
            bcast(t_pose_pad, T),
            pl.BlockSpec((None, cpk, T), lambda b: (b, 0, 0)),
            # pose Conv1dBlock
            bcast(feat_mid, kw_pose * cpp), bcast(feat_mid, 1),
            bcast(feat_mid, 1), bcast(feat_mid, 1),
            # key Conv1dBlock
            bcast(feat_mid, kw_key * cpk), bcast(feat_mid, 1),
            bcast(feat_mid, 1), bcast(feat_mid, 1),
            # TcwEncoder input Conv1dBlock
            bcast(C, kw_tcw * feat_mid), bcast(C, 1), bcast(C, 1), bcast(C, 1),
            # TDSConv2dBlock (block-diagonal weight)
            bcast(C, kw_tds * C), bcast(C, 1), bcast(C, 1), bcast(C, 1),
            # TDSFullyConnectedBlock
            bcast(C, C), bcast(C, 1), bcast(C, C), bcast(C, 1), bcast(C, 1), bcast(C, 1),
        ],
        out_specs=pl.BlockSpec((None, C, T), lambda b: (b, 0, 0)),
        compiler_params=pltpu.CompilerParams(
            dimension_semantics=("parallel",)),   # batch shards across v7x's 2 TCs
    )(pose_pad, m, key_pad,
      pcw2, _col(pcb), _col(pcg), _col(pcbt),
      kcw2, _col(kcb), _col(kcg), _col(kcbt),
      tcw2, _col(tcw_b), _col(tcw_g), _col(tcw_bt),
      dcw2, _col(dcb2), _col(dcg), _col(dcbt),
      f1w.astype(jnp.float32), _col(f1b), f2w.astype(jnp.float32), _col(f2b),
      _col(fcg), _col(fcbt))


# ---------------------------------------------------------------------------
# pure-JAX reference (mirrors the PyTorch module) for validation
# ---------------------------------------------------------------------------
def _linear_interp_time_ref(x, n_out):
    _, _, n_in = x.shape
    if n_out == n_in:
        return x
    pos = jnp.arange(n_out, dtype=jnp.float32) * ((n_in - 1) / (n_out - 1))
    lo = jnp.clip(jnp.floor(pos).astype(jnp.int32), 0, n_in - 2)
    frac = pos - lo.astype(jnp.float32)
    m = (jax.nn.one_hot(lo, n_in, dtype=x.dtype) * (1.0 - frac)[:, None]
         + jax.nn.one_hot(lo + 1, n_in, dtype=x.dtype) * frac[:, None])   # (n_out, n_in)
    return jnp.einsum("bci,oi->bco", x, m)


def _ln_channels_ref(y, gamma, beta, eps=_EPS):
    mean = y.mean(axis=1, keepdims=True)
    var = ((y - mean) ** 2).mean(axis=1, keepdims=True)
    return (y - mean) / jnp.sqrt(var + eps) * gamma[None, :, None] + beta[None, :, None]


def _conv1d_same_ref(x, w, b):
    kw = w.shape[-1]
    pad = (kw - 1) // 2
    T = x.shape[-1]
    xp = jnp.pad(x, ((0, 0), (0, 0), (pad, pad)))
    out = sum(jnp.einsum("oi,bit->bot", w[:, :, k], xp[:, :, k:k + T]) for k in range(kw))
    return out + b[None, :, None]


def _conv1d_block_ref(x, w, b, gamma, beta):
    return _ln_channels_ref(jnp.maximum(_conv1d_same_ref(x, w, b), 0.0), gamma, beta)


def _tds_conv2d_ref(x, w, b, gamma, beta):
    B, C, T = x.shape
    channels, _, kw = w.shape
    width = C // channels
    pad = (kw - 1) // 2
    xr = x.reshape(B, channels, width, T)
    xp = jnp.pad(xr, ((0, 0), (0, 0), (0, 0), (pad, pad)))
    out = sum(jnp.einsum("oi,biwt->bowt", w[:, :, k], xp[..., k:k + T]) for k in range(kw))
    out = out + b[None, :, None, None]
    out = jnp.maximum(out, 0.0).reshape(B, C, T) + x
    return _ln_channels_ref(out, gamma, beta)


def _tds_fc_ref(x, w1, b1, w2, b2, gamma, beta):
    h = jnp.maximum(jnp.einsum("oc,bct->bot", w1, x) + b1[None, :, None], 0.0)
    y = jnp.einsum("oc,bct->bot", w2, h) + b2[None, :, None] + x
    return _ln_channels_ref(y, gamma, beta)


def piano_kpm_forward_ref(params, pose, key_feats):
    n_time = round(pose.shape[-1] / 60 * 1024)
    pose_i = _linear_interp_time_ref(pose, n_time)
    pose_f = _conv1d_block_ref(pose_i, *params["pose_conv"])
    key_f = _conv1d_block_ref(key_feats, *params["key_conv"])
    x = _conv1d_block_ref(pose_f + key_f, *params["tcw_conv"])
    x = _tds_conv2d_ref(x, *params["tds_conv"])
    x = _tds_fc_ref(x, *params["tds_fc"])
    return x


if __name__ == "__main__":
    B = 2
    pose_in_ch, key_in_ch = 6, 4
    T_pose = 15                      # -> round(15 / 60 * 1024) = 256 interpolated samples
    T = 256                          # key stream length (matches interpolated pose)
    feat_mid = 16                    # pose/key conv output channels (TcwEncoder in_channels)
    channels, width = 4, 8           # TDS stage: C = channels*width = 32
    C = channels * width
    kw_in, kw_tds = 5, 3             # Conv1dBlock / TDSConv2dBlock kernel widths

    rng = jax.random.PRNGKey(0)
    ks = jax.random.split(rng, 20)

    def pn(k, *shape, scale=1.0):
        return scale * jax.random.normal(k, shape, jnp.float32)

    params = {
        "pose_conv": (pn(ks[0], feat_mid, pose_in_ch, kw_in, scale=0.3),
                      pn(ks[1], feat_mid, scale=0.1),
                      1.0 + 0.1 * pn(ks[2], feat_mid),
                      0.1 * pn(ks[3], feat_mid)),
        "key_conv": (pn(ks[4], feat_mid, key_in_ch, kw_in, scale=0.3),
                     pn(ks[5], feat_mid, scale=0.1),
                     1.0 + 0.1 * pn(ks[6], feat_mid),
                     0.1 * pn(ks[7], feat_mid)),
        "tcw_conv": (pn(ks[8], C, feat_mid, kw_in, scale=0.2),
                     pn(ks[9], C, scale=0.1),
                     1.0 + 0.1 * pn(ks[10], C),
                     0.1 * pn(ks[11], C)),
        "tds_conv": (pn(ks[12], channels, channels, kw_tds, scale=0.3),
                     pn(ks[13], channels, scale=0.1),
                     1.0 + 0.1 * pn(ks[14], C),
                     0.1 * pn(ks[15], C)),
        "tds_fc": (pn(ks[16], C, C, scale=0.15), pn(ks[17], C, scale=0.1),
                   pn(ks[18], C, C, scale=0.15), pn(ks[19], C, scale=0.1),
                   jnp.ones((C,), jnp.float32), jnp.zeros((C,), jnp.float32)),
    }

    pose = jax.random.normal(jax.random.PRNGKey(1), (B, pose_in_ch, T_pose), jnp.float32)
    key_feats = jax.random.normal(jax.random.PRNGKey(2), (B, key_in_ch, T), jnp.float32)

    out = jax.block_until_ready(piano_kpm_forward(params, pose, key_feats))
    ref = piano_kpm_forward_ref(params, pose, key_feats)
    assert out.shape == (B, C, T), out.shape
    max_err = float(jnp.max(jnp.abs(out - ref)))
    assert jnp.allclose(out, ref, atol=2e-3, rtol=2e-3), max_err
    assert bool(jnp.isfinite(out).all())

    print("KERNEL_OK")
</pallas_src>

<mosaic_0001>
module attributes {stable_mosaic.version = 11 : i64} {
  func.func @kernel(%arg0: i32, %arg1: memref<1x8x128xf32, #tpu.memory_space<vmem>>, %arg2: memref<128x256xf32, #tpu.memory_space<vmem>>, %arg3: memref<1x8x256xf32, #tpu.memory_space<vmem>>, %arg4: memref<16x40xf32, #tpu.memory_space<vmem>>, %arg5: memref<16x1xf32, #tpu.memory_space<vmem>>, %arg6: memref<16x1xf32, #tpu.memory_space<vmem>>, %arg7: memref<16x1xf32, #tpu.memory_space<vmem>>, %arg8: memref<16x40xf32, #tpu.memory_space<vmem>>, %arg9: memref<16x1xf32, #tpu.memory_space<vmem>>, %arg10: memref<16x1xf32, #tpu.memory_space<vmem>>, %arg11: memref<16x1xf32, #tpu.memory_space<vmem>>, %arg12: memref<32x80xf32, #tpu.memory_space<vmem>>, %arg13: memref<32x1xf32, #tpu.memory_space<vmem>>, %arg14: memref<32x1xf32, #tpu.memory_space<vmem>>, %arg15: memref<32x1xf32, #tpu.memory_space<vmem>>, %arg16: memref<32x96xf32, #tpu.memory_space<vmem>>, %arg17: memref<32x1xf32, #tpu.memory_space<vmem>>, %arg18: memref<32x1xf32, #tpu.memory_space<vmem>>, %arg19: memref<32x1xf32, #tpu.memory_space<vmem>>, %arg20: memref<32x32xf32, #tpu.memory_space<vmem>>, %arg21: memref<32x1xf32, #tpu.memory_space<vmem>>, %arg22: memref<32x32xf32, #tpu.memory_space<vmem>>, %arg23: memref<32x1xf32, #tpu.memory_space<vmem>>, %arg24: memref<32x1xf32, #tpu.memory_space<vmem>>, %arg25: memref<32x1xf32, #tpu.memory_space<vmem>>, %arg26: memref<1x32x256xf32, #tpu.memory_space<vmem>>) attributes {dimension_semantics = [#tpu.dimension_semantics<parallel>], iteration_bounds = array<i64: 2>, scalar_prefetch = 0 : i64, scratch_operands = 0 : i64, tpu.core_type = #tpu.core_type<tc>, window_params = [{transform_indices = @transform_0, window_bounds = array<i64: 1, 8, 128>}, {pipeline_mode = #tpu.pipeline_mode<synchronous>, transform_indices = @transform_1, window_bounds = array<i64: 128, 256>}, {transform_indices = @transform_2, window_bounds = array<i64: 1, 8, 256>}, {pipeline_mode = #tpu.pipeline_mode<synchronous>, transform_indices = @transform_3, window_bounds = array<i64: 16, 40>}, {pipeline_mode = #tpu.pipeline_mode<synchronous>, transform_indices = @transform_4, window_bounds = array<i64: 16, 1>}, {pipeline_mode = #tpu.pipeline_mode<synchronous>, transform_indices = @transform_5, window_bounds = array<i64: 16, 1>}, {pipeline_mode = #tpu.pipeline_mode<synchronous>, transform_indices = @transform_6, window_bounds = array<i64: 16, 1>}, {pipeline_mode = #tpu.pipeline_mode<synchronous>, transform_indices = @transform_7, window_bounds = array<i64: 16, 40>}, {pipeline_mode = #tpu.pipeline_mode<synchronous>, transform_indices = @transform_8, window_bounds = array<i64: 16, 1>}, {pipeline_mode = #tpu.pipeline_mode<synchronous>, transform_indices = @transform_9, window_bounds = array<i64: 16, 1>}, {pipeline_mode = #tpu.pipeline_mode<synchronous>, transform_indices = @transform_10, window_bounds = array<i64: 16, 1>}, {pipeline_mode = #tpu.pipeline_mode<synchronous>, transform_indices = @transform_11, window_bounds = array<i64: 32, 80>}, {pipeline_mode = #tpu.pipeline_mode<synchronous>, transform_indices = @transform_12, window_bounds = array<i64: 32, 1>}, {pipeline_mode = #tpu.pipeline_mode<synchronous>, transform_indices = @transform_13, window_bounds = array<i64: 32, 1>}, {pipeline_mode = #tpu.pipeline_mode<synchronous>, transform_indices = @transform_14, window_bounds = array<i64: 32, 1>}, {pipeline_mode = #tpu.pipeline_mode<synchronous>, transform_indices = @transform_15, window_bounds = array<i64: 32, 96>}, {pipeline_mode = #tpu.pipeline_mode<synchronous>, transform_indices = @transform_16, window_bounds = array<i64: 32, 1>}, {pipeline_mode = #tpu.pipeline_mode<synchronous>, transform_indices = @transform_17, window_bounds = array<i64: 32, 1>}, {pipeline_mode = #tpu.pipeline_mode<synchronous>, transform_indices = @transform_18, window_bounds = array<i64: 32, 1>}, {pipeline_mode = #tpu.pipeline_mode<synchronous>, transform_indices = @transform_19, window_bounds = array<i64: 32, 32>}, {pipeline_mode = #tpu.pipeline_mode<synchronous>, transform_indices = @transform_20, window_bounds = array<i64: 32, 1>}, {pipeline_mode = #tpu.pipeline_mode<synchronous>, transform_indices = @transform_21, window_bounds = array<i64: 32, 32>}, {pipeline_mode = #tpu.pipeline_mode<synchronous>, transform_indices = @transform_22, window_bounds = array<i64: 32, 1>}, {pipeline_mode = #tpu.pipeline_mode<synchronous>, transform_indices = @transform_23, window_bounds = array<i64: 32, 1>}, {pipeline_mode = #tpu.pipeline_mode<synchronous>, transform_indices = @transform_24, window_bounds = array<i64: 32, 1>}, {transform_indices = @transform_25, window_bounds = array<i64: 1, 32, 256>}]} {
    %c0 = arith.constant 0 : index
    %c0_0 = arith.constant 0 : index
    %c0_1 = arith.constant 0 : index
    %0 = vector.load %arg1[%c0, %c0_0, %c0_1] : memref<1x8x128xf32, #tpu.memory_space<vmem>>, vector<1x8x128xf32>
    %1 = vector.shape_cast %0 : vector<1x8x128xf32> to vector<8x128xf32>
    %c0_2 = arith.constant 0 : index
    %c0_3 = arith.constant 0 : index
    %2 = vector.load %arg2[%c0_2, %c0_3] : memref<128x256xf32, #tpu.memory_space<vmem>>, vector<128x256xf32>
    %cst = arith.constant dense<0.000000e+00> : vector<8x256xf32>
    %3 = tpu.matmul %1, %2, %cst {dimension_numbers = #tpu.dot_dimension_numbers<[1], [0], [0], [1], [0, 0, 1, 1], [], []>} : vector<8x128xf32>, vector<128x256xf32>, vector<8x256xf32> -> vector<8x256xf32>
    %c0_4 = arith.constant 0 : index
    %c0_5 = arith.constant 0 : index
    %4 = vector.load %arg4[%c0_4, %c0_5] : memref<16x40xf32, #tpu.memory_space<vmem>>, vector<16x40xf32>
    %c0_6 = arith.constant 0 : index
    %c0_7 = arith.constant 0 : index
    %5 = vector.load %arg5[%c0_6, %c0_7] : memref<16x1xf32, #tpu.memory_space<vmem>>, vector<16x1xf32>
    %c0_8 = arith.constant 0 : index
    %c0_9 = arith.constant 0 : index
    %6 = vector.load %arg6[%c0_8, %c0_9] : memref<16x1xf32, #tpu.memory_space<vmem>>, vector<16x1xf32>
    %c0_10 = arith.constant 0 : index
    %c0_11 = arith.constant 0 : index
    %7 = vector.load %arg7[%c0_10, %c0_11] : memref<16x1xf32, #tpu.memory_space<vmem>>, vector<16x1xf32>
    %c2_i32 = arith.constant 2 : i32
    %8 = tpu.dynamic_rotate %3 by %c2_i32 dim 1 : vector<8x256xf32>, i32 -> vector<8x256xf32>
    %9 = tpu.iota {dimensions = array<i32: 1>} : vector<8x256xi32>
    %c-2_i32 = arith.constant -2 : i32
    %10 = vector.broadcast %c-2_i32 : i32 to vector<8x256xi32>
    %11 = arith.addi %9, %10 : vector<8x256xi32>
    %c0_i32 = arith.constant 0 : i32
    %12 = vector.broadcast %c0_i32 : i32 to vector<8x256xi32>
    %13 = arith.cmpi sge, %11, %12 : vector<8x256xi32>
    %c-2_i32_12 = arith.constant -2 : i32
    %14 = vector.broadcast %c-2_i32_12 : i32 to vector<8x256xi32>
    %15 = arith.addi %9, %14 : vector<8x256xi32>
    %c256_i32 = arith.constant 256 : i32
    %16 = vector.broadcast %c256_i32 : i32 to vector<8x256xi32>
    %17 = arith.cmpi slt, %15, %16 : vector<8x256xi32>
    %18 = arith.andi %13, %17 : vector<8x256xi1>
    %cst_13 = arith.constant 0.000000e+00 : f32
    %19 = vector.broadcast %cst_13 : f32 to vector<8x256xf32>
    %20 = arith.select %18, %8, %19 : vector<8x256xi1>, vector<8x256xf32>
    %c1_i32 = arith.constant 1 : i32
    %21 = tpu.dynamic_rotate %3 by %c1_i32 dim 1 : vector<8x256xf32>, i32 -> vector<8x256xf32>
    %22 = tpu.iota {dimensions = array<i32: 1>} : vector<8x256xi32>
    %c-1_i32 = arith.constant -1 : i32
    %23 = vector.broadcast %c-1_i32 : i32 to vector<8x256xi32>
    %24 = arith.addi %22, %23 : vector<8x256xi32>
    %c0_i32_14 = arith.constant 0 : i32
    %25 = vector.broadcast %c0_i32_14 : i32 to vector<8x256xi32>
    %26 = arith.cmpi sge, %24, %25 : vector<8x256xi32>
    %c-1_i32_15 = arith.constant -1 : i32
    %27 = vector.broadcast %c-1_i32_15 : i32 to vector<8x256xi32>
    %28 = arith.addi %22, %27 : vector<8x256xi32>
    %c256_i32_16 = arith.constant 256 : i32
    %29 = vector.broadcast %c256_i32_16 : i32 to vector<8x256xi32>
    %30 = arith.cmpi slt, %28, %29 : vector<8x256xi32>
    %31 = arith.andi %26, %30 : vector<8x256xi1>
    %cst_17 = arith.constant 0.000000e+00 : f32
    %32 = vector.broadcast %cst_17 : f32 to vector<8x256xf32>
    %33 = arith.select %31, %21, %32 : vector<8x256xi1>, vector<8x256xf32>
    %c255_i32 = arith.constant 255 : i32
    %34 = tpu.dynamic_rotate %3 by %c255_i32 dim 1 : vector<8x256xf32>, i32 -> vector<8x256xf32>
    %35 = tpu.iota {dimensions = array<i32: 1>} : vector<8x256xi32>
    %c1_i32_18 = arith.constant 1 : i32
    %36 = vector.broadcast %c1_i32_18 : i32 to vector<8x256xi32>
    %37 = arith.addi %35, %36 : vector<8x256xi32>
    %c0_i32_19 = arith.constant 0 : i32
    %38 = vector.broadcast %c0_i32_19 : i32 to vector<8x256xi32>
    %39 = arith.cmpi sge, %37, %38 : vector<8x256xi32>
    %c1_i32_20 = arith.constant 1 : i32
    %40 = vector.broadcast %c1_i32_20 : i32 to vector<8x256xi32>
    %41 = arith.addi %35, %40 : vector<8x256xi32>
    %c256_i32_21 = arith.constant 256 : i32
    %42 = vector.broadcast %c256_i32_21 : i32 to vector<8x256xi32>
    %43 = arith.cmpi slt, %41, %42 : vector<8x256xi32>
    %44 = arith.andi %39, %43 : vector<8x256xi1>
    %cst_22 = arith.constant 0.000000e+00 : f32
    %45 = vector.broadcast %cst_22 : f32 to vector<8x256xf32>
    %46 = arith.select %44, %34, %45 : vector<8x256xi1>, vector<8x256xf32>
    %c254_i32 = arith.constant 254 : i32
    %47 = tpu.dynamic_rotate %3 by %c254_i32 dim 1 : vector<8x256xf32>, i32 -> vector<8x256xf32>
    %48 = tpu.iota {dimensions = array<i32: 1>} : vector<8x256xi32>
    %c2_i32_23 = arith.constant 2 : i32
    %49 = vector.broadcast %c2_i32_23 : i32 to vector<8x256xi32>
    %50 = arith.addi %48, %49 : vector<8x256xi32>
    %c0_i32_24 = arith.constant 0 : i32
    %51 = vector.broadcast %c0_i32_24 : i32 to vector<8x256xi32>
    %52 = arith.cmpi sge, %50, %51 : vector<8x256xi32>
    %c2_i32_25 = arith.constant 2 : i32
    %53 = vector.broadcast %c2_i32_25 : i32 to vector<8x256xi32>
    %54 = arith.addi %48, %53 : vector<8x256xi32>
    %c256_i32_26 = arith.constant 256 : i32
    %55 = vector.broadcast %c256_i32_26 : i32 to vector<8x256xi32>
    %56 = arith.cmpi slt, %54, %55 : vector<8x256xi32>
    %57 = arith.andi %52, %56 : vector<8x256xi1>
    %cst_27 = arith.constant 0.000000e+00 : f32
    %58 = vector.broadcast %cst_27 : f32 to vector<8x256xf32>
    %59 = arith.select %57, %47, %58 : vector<8x256xi1>, vector<8x256xf32>
    %60 = tpu.concatenate %20, %33, %3, %46, %59 in 0 : vector<8x256xf32>, vector<8x256xf32>, vector<8x256xf32>, vector<8x256xf32>, vector<8x256xf32> -> vector<40x256xf32>
    %cst_28 = arith.constant dense<0.000000e+00> : vector<16x256xf32>
    %61 = tpu.matmul %4, %60, %cst_28 {dimension_numbers = #tpu.dot_dimension_numbers<[1], [0], [0], [1], [0, 0, 1, 1], [], []>} : vector<16x40xf32>, vector<40x256xf32>, vector<16x256xf32> -> vector<16x256xf32>
    %62 = vector.broadcast %5 : vector<16x1xf32> to vector<16x256xf32>
    %63 = arith.addf %61, %62 : vector<16x256xf32>
    %cst_29 = arith.constant 0.000000e+00 : f32
    %64 = vector.broadcast %cst_29 : f32 to vector<16x256xf32>
    %65 = arith.maximumf %63, %64 : vector<16x256xf32>
    %cst_30 = arith.constant dense<0.000000e+00> : vector<256xf32>
    %66 = vector.multi_reduction <add>, %65, %cst_30 [0] : vector<16x256xf32> to vector<256xf32>
    %67 = vector.shape_cast %66 : vector<256xf32> to vector<1x256xf32>
    %cst_31 = arith.constant 6.250000e-02 : f32
    %68 = vector.broadcast %cst_31 : f32 to vector<1x256xf32>
    %69 = arith.mulf %67, %68 : vector<1x256xf32>
    %70 = vector.broadcast %69 : vector<1x256xf32> to vector<16x256xf32>
    %71 = arith.subf %65, %70 : vector<16x256xf32>
    %72 = arith.mulf %71, %71 : vector<16x256xf32>
    %cst_32 = arith.constant dense<0.000000e+00> : vector<256xf32>
    %73 = vector.multi_reduction <add>, %72, %cst_32 [0] : vector<16x256xf32> to vector<256xf32>
    %74 = vector.shape_cast %73 : vector<256xf32> to vector<1x256xf32>
    %cst_33 = arith.constant 6.250000e-02 : f32
    %75 = vector.broadcast %cst_33 : f32 to vector<1x256xf32>
    %76 = arith.mulf %74, %75 : vector<1x256xf32>
    %cst_34 = arith.constant 9.99999974E-6 : f32
    %77 = vector.broadcast %cst_34 : f32 to vector<1x256xf32>
    %78 = arith.addf %76, %77 : vector<1x256xf32>
    %79 = math.rsqrt %78 : vector<1x256xf32>
    %80 = vector.broadcast %79 : vector<1x256xf32> to vector<16x256xf32>
    %81 = arith.mulf %71, %80 : vector<16x256xf32>
    %82 = vector.broadcast %6 : vector<16x1xf32> to vector<16x256xf32>
    %83 = arith.mulf %81, %82 : vector<16x256xf32>
    %84 = vector.broadcast %7 : vector<16x1xf32> to vector<16x256xf32>
    %85 = arith.addf %83, %84 : vector<16x256xf32>
    %c0_35 = arith.constant 0 : index
    %c0_36 = arith.constant 0 : index
    %c0_37 = arith.constant 0 : index
    %86 = vector.load %arg3[%c0_35, %c0_36, %c0_37] : memref<1x8x256xf32, #tpu.memory_space<vmem>>, vector<1x8x256xf32>
    %87 = vector.shape_cast %86 : vector<1x8x256xf32> to vector<8x256xf32>
    %c0_38 = arith.constant 0 : index
    %c0_39 = arith.constant 0 : index
    %88 = vector.load %arg8[%c0_38, %c0_39] : memref<16x40xf32, #tpu.memory_space<vmem>>, vector<16x40xf32>
    %c0_40 = arith.constant 0 : index
    %c0_41 = arith.constant 0 : index
    %89 = vector.load %arg9[%c0_40, %c0_41] : memref<16x1xf32, #tpu.memory_space<vmem>>, vector<16x1xf32>
    %c0_42 = arith.constant 0 : index
    %c0_43 = arith.constant 0 : index
    %90 = vector.load %arg10[%c0_42, %c0_43] : memref<16x1xf32, #tpu.memory_space<vmem>>, vector<16x1xf32>
    %c0_44 = arith.constant 0 : index
    %c0_45 = arith.constant 0 : index
    %91 = vector.load %arg11[%c0_44, %c0_45] : memref<16x1xf32, #tpu.memory_space<vmem>>, vector<16x1xf32>
    %c2_i32_46 = arith.constant 2 : i32
    %92 = tpu.dynamic_rotate %87 by %c2_i32_46 dim 1 : vector<8x256xf32>, i32 -> vector<8x256xf32>
    %93 = tpu.iota {dimensions = array<i32: 1>} : vector<8x256xi32>
    %c-2_i32_47 = arith.constant -2 : i32
    %94 = vector.broadcast %c-2_i32_47 : i32 to vector<8x256xi32>
    %95 = arith.addi %93, %94 : vector<8x256xi32>
    %c0_i32_48 = arith.constant 0 : i32
    %96 = vector.broadcast %c0_i32_48 : i32 to vector<8x256xi32>
    %97 = arith.cmpi sge, %95, %96 : vector<8x256xi32>
    %c-2_i32_49 = arith.constant -2 : i32
    %98 = vector.broadcast %c-2_i32_49 : i32 to vector<8x256xi32>
    %99 = arith.addi %93, %98 : vector<8x256xi32>
    %c256_i32_50 = arith.constant 256 : i32
    %100 = vector.broadcast %c256_i32_50 : i32 to vector<8x256xi32>
    %101 = arith.cmpi slt, %99, %100 : vector<8x256xi32>
    %102 = arith.andi %97, %101 : vector<8x256xi1>
    %cst_51 = arith.constant 0.000000e+00 : f32
    %103 = vector.broadcast %cst_51 : f32 to vector<8x256xf32>
    %104 = arith.select %102, %92, %103 : vector<8x256xi1>, vector<8x256xf32>
    %c1_i32_52 = arith.constant 1 : i32
    %105 = tpu.dynamic_rotate %87 by %c1_i32_52 dim 1 : vector<8x256xf32>, i32 -> vector<8x256xf32>
    %106 = tpu.iota {dimensions = array<i32: 1>} : vector<8x256xi32>
    %c-1_i32_53 = arith.constant -1 : i32
    %107 = vector.broadcast %c-1_i32_53 : i32 to vector<8x256xi32>
    %108 = arith.addi %106, %107 : vector<8x256xi32>
    %c0_i32_54 = arith.constant 0 : i32
    %109 = vector.broadcast %c0_i32_54 : i32 to vector<8x256xi32>
    %110 = arith.cmpi sge, %108, %109 : vector<8x256xi32>
    %c-1_i32_55 = arith.constant -1 : i32
    %111 = vector.broadcast %c-1_i32_55 : i32 to vector<8x256xi32>
    %112 = arith.addi %106, %111 : vector<8x256xi32>
    %c256_i32_56 = arith.constant 256 : i32
    %113 = vector.broadcast %c256_i32_56 : i32 to vector<8x256xi32>
    %114 = arith.cmpi slt, %112, %113 : vector<8x256xi32>
    %115 = arith.andi %110, %114 : vector<8x256xi1>
    %cst_57 = arith.constant 0.000000e+00 : f32
    %116 = vector.broadcast %cst_57 : f32 to vector<8x256xf32>
    %117 = arith.select %115, %105, %116 : vector<8x256xi1>, vector<8x256xf32>
    %c255_i32_58 = arith.constant 255 : i32
    %118 = tpu.dynamic_rotate %87 by %c255_i32_58 dim 1 : vector<8x256xf32>, i32 -> vector<8x256xf32>
    %119 = tpu.iota {dimensions = array<i32: 1>} : vector<8x256xi32>
    %c1_i32_59 = arith.constant 1 : i32
    %120 = vector.broadcast %c1_i32_59 : i32 to vector<8x256xi32>
    %121 = arith.addi %119, %120 : vector<8x256xi32>
    %c0_i32_60 = arith.constant 0 : i32
    %122 = vector.broadcast %c0_i32_60 : i32 to vector<8x256xi32>
    %123 = arith.cmpi sge, %121, %122 : vector<8x256xi32>
    %c1_i32_61 = arith.constant 1 : i32
    %124 = vector.broadcast %c1_i32_61 : i32 to vector<8x256xi32>
    %125 = arith.addi %119, %124 : vector<8x256xi32>
    %c256_i32_62 = arith.constant 256 : i32
    %126 = vector.broadcast %c256_i32_62 : i32 to vector<8x256xi32>
    %127 = arith.cmpi slt, %125, %126 : vector<8x256xi32>
    %128 = arith.andi %123, %127 : vector<8x256xi1>
    %cst_63 = arith.constant 0.000000e+00 : f32
    %129 = vector.broadcast %cst_63 : f32 to vector<8x256xf32>
    %130 = arith.select %128, %118, %129 : vector<8x256xi1>, vector<8x256xf32>
    %c254_i32_64 = arith.constant 254 : i32
    %131 = tpu.dynamic_rotate %87 by %c254_i32_64 dim 1 : vector<8x256xf32>, i32 -> vector<8x256xf32>
    %132 = tpu.iota {dimensions = array<i32: 1>} : vector<8x256xi32>
    %c2_i32_65 = arith.constant 2 : i32
    %133 = vector.broadcast %c2_i32_65 : i32 to vector<8x256xi32>
    %134 = arith.addi %132, %133 : vector<8x256xi32>
    %c0_i32_66 = arith.constant 0 : i32
    %135 = vector.broadcast %c0_i32_66 : i32 to vector<8x256xi32>
    %136 = arith.cmpi sge, %134, %135 : vector<8x256xi32>
    %c2_i32_67 = arith.constant 2 : i32
    %137 = vector.broadcast %c2_i32_67 : i32 to vector<8x256xi32>
    %138 = arith.addi %132, %137 : vector<8x256xi32>
    %c256_i32_68 = arith.constant 256 : i32
    %139 = vector.broadcast %c256_i32_68 : i32 to vector<8x256xi32>
    %140 = arith.cmpi slt, %138, %139 : vector<8x256xi32>
    %141 = arith.andi %136, %140 : vector<8x256xi1>
    %cst_69 = arith.constant 0.000000e+00 : f32
    %142 = vector.broadcast %cst_69 : f32 to vector<8x256xf32>
    %143 = arith.select %141, %131, %142 : vector<8x256xi1>, vector<8x256xf32>
    %144 = tpu.concatenate %104, %117, %87, %130, %143 in 0 : vector<8x256xf32>, vector<8x256xf32>, vector<8x256xf32>, vector<8x256xf32>, vector<8x256xf32> -> vector<40x256xf32>
    %cst_70 = arith.constant dense<0.000000e+00> : vector<16x256xf32>
    %145 = tpu.matmul %88, %144, %cst_70 {dimension_numbers = #tpu.dot_dimension_numbers<[1], [0], [0], [1], [0, 0, 1, 1], [], []>} : vector<16x40xf32>, vector<40x256xf32>, vector<16x256xf32> -> vector<16x256xf32>
    %146 = vector.broadcast %89 : vector<16x1xf32> to vector<16x256xf32>
    %147 = arith.addf %145, %146 : vector<16x256xf32>
    %cst_71 = arith.constant 0.000000e+00 : f32
    %148 = vector.broadcast %cst_71 : f32 to vector<16x256xf32>
    %149 = arith.maximumf %147, %148 : vector<16x256xf32>
    %cst_72 = arith.constant dense<0.000000e+00> : vector<256xf32>
    %150 = vector.multi_reduction <add>, %149, %cst_72 [0] : vector<16x256xf32> to vector<256xf32>
    %151 = vector.shape_cast %150 : vector<256xf32> to vector<1x256xf32>
    %cst_73 = arith.constant 6.250000e-02 : f32
    %152 = vector.broadcast %cst_73 : f32 to vector<1x256xf32>
    %153 = arith.mulf %151, %152 : vector<1x256xf32>
    %154 = vector.broadcast %153 : vector<1x256xf32> to vector<16x256xf32>
    %155 = arith.subf %149, %154 : vector<16x256xf32>
    %156 = arith.mulf %155, %155 : vector<16x256xf32>
    %cst_74 = arith.constant dense<0.000000e+00> : vector<256xf32>
    %157 = vector.multi_reduction <add>, %156, %cst_74 [0] : vector<16x256xf32> to vector<256xf32>
    %158 = vector.shape_cast %157 : vector<256xf32> to vector<1x256xf32>
    %cst_75 = arith.constant 6.250000e-02 : f32
    %159 = vector.broadcast %cst_75 : f32 to vector<1x256xf32>
    %160 = arith.mulf %158, %159 : vector<1x256xf32>
    %cst_76 = arith.constant 9.99999974E-6 : f32
    %161 = vector.broadcast %cst_76 : f32 to vector<1x256xf32>
    %162 = arith.addf %160, %161 : vector<1x256xf32>
    %163 = math.rsqrt %162 : vector<1x256xf32>
    %164 = vector.broadcast %163 : vector<1x256xf32> to vector<16x256xf32>
    %165 = arith.mulf %155, %164 : vector<16x256xf32>
    %166 = vector.broadcast %90 : vector<16x1xf32> to vector<16x256xf32>
    %167 = arith.mulf %165, %166 : vector<16x256xf32>
    %168 = vector.broadcast %91 : vector<16x1xf32> to vector<16x256xf32>
    %169 = arith.addf %167, %168 : vector<16x256xf32>
    %170 = arith.addf %85, %169 : vector<16x256xf32>
    %c0_77 = arith.constant 0 : index
    %c0_78 = arith.constant 0 : index
    %171 = vector.load %arg12[%c0_77, %c0_78] : memref<32x80xf32, #tpu.memory_space<vmem>>, vector<32x80xf32>
    %c0_79 = arith.constant 0 : index
    %c0_80 = arith.constant 0 : index
    %172 = vector.load %arg13[%c0_79, %c0_80] : memref<32x1xf32, #tpu.memory_space<vmem>>, vector<32x1xf32>
    %c0_81 = arith.constant 0 : index
    %c0_82 = arith.constant 0 : index
    %173 = vector.load %arg14[%c0_81, %c0_82] : memref<32x1xf32, #tpu.memory_space<vmem>>, vector<32x1xf32>
    %c0_83 = arith.constant 0 : index
    %c0_84 = arith.constant 0 : index
    %174 = vector.load %arg15[%c0_83, %c0_84] : memref<32x1xf32, #tpu.memory_space<vmem>>, vector<32x1xf32>
    %c2_i32_85 = arith.constant 2 : i32
    %175 = tpu.dynamic_rotate %170 by %c2_i32_85 dim 1 : vector<16x256xf32>, i32 -> vector<16x256xf32>
    %176 = tpu.iota {dimensions = array<i32: 1>} : vector<16x256xi32>
    %c-2_i32_86 = arith.constant -2 : i32
    %177 = vector.broadcast %c-2_i32_86 : i32 to vector<16x256xi32>
    %178 = arith.addi %176, %177 : vector<16x256xi32>
    %c0_i32_87 = arith.constant 0 : i32
    %179 = vector.broadcast %c0_i32_87 : i32 to vector<16x256xi32>
    %180 = arith.cmpi sge, %178, %179 : vector<16x256xi32>
    %c-2_i32_88 = arith.constant -2 : i32
    %181 = vector.broadcast %c-2_i32_88 : i32 to vector<16x256xi32>
    %182 = arith.addi %176, %181 : vector<16x256xi32>
    %c256_i32_89 = arith.constant 256 : i32
    %183 = vector.broadcast %c256_i32_89 : i32 to vector<16x256xi32>
    %184 = arith.cmpi slt, %182, %183 : vector<16x256xi32>
    %185 = arith.andi %180, %184 : vector<16x256xi1>
    %cst_90 = arith.constant 0.000000e+00 : f32
    %186 = vector.broadcast %cst_90 : f32 to vector<16x256xf32>
    %187 = arith.select %185, %175, %186 : vector<16x256xi1>, vector<16x256xf32>
    %c1_i32_91 = arith.constant 1 : i32
    %188 = tpu.dynamic_rotate %170 by %c1_i32_91 dim 1 : vector<16x256xf32>, i32 -> vector<16x256xf32>
    %189 = tpu.iota {dimensions = array<i32: 1>} : vector<16x256xi32>
    %c-1_i32_92 = arith.constant -1 : i32
    %190 = vector.broadcast %c-1_i32_92 : i32 to vector<16x256xi32>
    %191 = arith.addi %189, %190 : vector<16x256xi32>
    %c0_i32_93 = arith.constant 0 : i32
    %192 = vector.broadcast %c0_i32_93 : i32 to vector<16x256xi32>
    %193 = arith.cmpi sge, %191, %192 : vector<16x256xi32>
    %c-1_i32_94 = arith.constant -1 : i32
    %194 = vector.broadcast %c-1_i32_94 : i32 to vector<16x256xi32>
    %195 = arith.addi %189, %194 : vector<16x256xi32>
    %c256_i32_95 = arith.constant 256 : i32
    %196 = vector.broadcast %c256_i32_95 : i32 to vector<16x256xi32>
    %197 = arith.cmpi slt, %195, %196 : vector<16x256xi32>
    %198 = arith.andi %193, %197 : vector<16x256xi1>
    %cst_96 = arith.constant 0.000000e+00 : f32
    %199 = vector.broadcast %cst_96 : f32 to vector<16x256xf32>
    %200 = arith.select %198, %188, %199 : vector<16x256xi1>, vector<16x256xf32>
    %c255_i32_97 = arith.constant 255 : i32
    %201 = tpu.dynamic_rotate %170 by %c255_i32_97 dim 1 : vector<16x256xf32>, i32 -> vector<16x256xf32>
    %202 = tpu.iota {dimensions = array<i32: 1>} : vector<16x256xi32>
    %c1_i32_98 = arith.constant 1 : i32
    %203 = vector.broadcast %c1_i32_98 : i32 to vector<16x256xi32>
    %204 = arith.addi %202, %203 : vector<16x256xi32>
    %c0_i32_99 = arith.constant 0 : i32
    %205 = vector.broadcast %c0_i32_99 : i32 to vector<16x256xi32>
    %206 = arith.cmpi sge, %204, %205 : vector<16x256xi32>
    %c1_i32_100 = arith.constant 1 : i32
    %207 = vector.broadcast %c1_i32_100 : i32 to vector<16x256xi32>
    %208 = arith.addi %202, %207 : vector<16x256xi32>
    %c256_i32_101 = arith.constant 256 : i32
    %209 = vector.broadcast %c256_i32_101 : i32 to vector<16x256xi32>
    %210 = arith.cmpi slt, %208, %209 : vector<16x256xi32>
    %211 = arith.andi %206, %210 : vector<16x256xi1>
    %cst_102 = arith.constant 0.000000e+00 : f32
    %212 = vector.broadcast %cst_102 : f32 to vector<16x256xf32>
    %213 = arith.select %211, %201, %212 : vector<16x256xi1>, vector<16x256xf32>
    %c254_i32_103 = arith.constant 254 : i32
    %214 = tpu.dynamic_rotate %170 by %c254_i32_103 dim 1 : vector<16x256xf32>, i32 -> vector<16x256xf32>
    %215 = tpu.iota {dimensions = array<i32: 1>} : vector<16x256xi32>
    %c2_i32_104 = arith.constant 2 : i32
    %216 = vector.broadcast %c2_i32_104 : i32 to vector<16x256xi32>
    %217 = arith.addi %215, %216 : vector<16x256xi32>
    %c0_i32_105 = arith.constant 0 : i32
    %218 = vector.broadcast %c0_i32_105 : i32 to vector<16x256xi32>
    %219 = arith.cmpi sge, %217, %218 : vector<16x256xi32>
    %c2_i32_106 = arith.constant 2 : i32
    %220 = vector.broadcast %c2_i32_106 : i32 to vector<16x256xi32>
    %221 = arith.addi %215, %220 : vector<16x256xi32>
    %c256_i32_107 = arith.constant 256 : i32
    %222 = vector.broadcast %c256_i32_107 : i32 to vector<16x256xi32>
    %223 = arith.cmpi slt, %221, %222 : vector<16x256xi32>
    %224 = arith.andi %219, %223 : vector<16x256xi1>
    %cst_108 = arith.constant 0.000000e+00 : f32
    %225 = vector.broadcast %cst_108 : f32 to vector<16x256xf32>
    %226 = arith.select %224, %214, %225 : vector<16x256xi1>, vector<16x256xf32>
    %227 = tpu.concatenate %187, %200, %170, %213, %226 in 0 : vector<16x256xf32>, vector<16x256xf32>, vector<16x256xf32>, vector<16x256xf32>, vector<16x256xf32> -> vector<80x256xf32>
    %cst_109 = arith.constant dense<0.000000e+00> : vector<32x256xf32>
    %228 = tpu.matmul %171, %227, %cst_109 {dimension_numbers = #tpu.dot_dimension_numbers<[1], [0], [0], [1], [0, 0, 1, 1], [], []>} : vector<32x80xf32>, vector<80x256xf32>, vector<32x256xf32> -> vector<32x256xf32>
    %229 = vector.broadcast %172 : vector<32x1xf32> to vector<32x256xf32>
    %230 = arith.addf %228, %229 : vector<32x256xf32>
    %cst_110 = arith.constant 0.000000e+00 : f32
    %231 = vector.broadcast %cst_110 : f32 to vector<32x256xf32>
    %232 = arith.maximumf %230, %231 : vector<32x256xf32>
    %cst_111 = arith.constant dense<0.000000e+00> : vector<256xf32>
    %233 = vector.multi_reduction <add>, %232, %cst_111 [0] : vector<32x256xf32> to vector<256xf32>
    %234 = vector.shape_cast %233 : vector<256xf32> to vector<1x256xf32>
    %cst_112 = arith.constant 3.125000e-02 : f32
    %235 = vector.broadcast %cst_112 : f32 to vector<1x256xf32>
    %236 = arith.mulf %234, %235 : vector<1x256xf32>
    %237 = vector.broadcast %236 : vector<1x256xf32> to vector<32x256xf32>
    %238 = arith.subf %232, %237 : vector<32x256xf32>
    %239 = arith.mulf %238, %238 : vector<32x256xf32>
    %cst_113 = arith.constant dense<0.000000e+00> : vector<256xf32>
    %240 = vector.multi_reduction <add>, %239, %cst_113 [0] : vector<32x256xf32> to vector<256xf32>
    %241 = vector.shape_cast %240 : vector<256xf32> to vector<1x256xf32>
    %cst_114 = arith.constant 3.125000e-02 : f32
    %242 = vector.broadcast %cst_114 : f32 to vector<1x256xf32>
    %243 = arith.mulf %241, %242 : vector<1x256xf32>
    %cst_115 = arith.constant 9.99999974E-6 : f32
    %244 = vector.broadcast %cst_115 : f32 to vector<1x256xf32>
    %245 = arith.addf %243, %244 : vector<1x256xf32>
    %246 = math.rsqrt %245 : vector<1x256xf32>
    %247 = vector.broadcast %246 : vector<1x256xf32> to vector<32x256xf32>
    %248 = arith.mulf %238, %247 : vector<32x256xf32>
    %249 = vector.broadcast %173 : vector<32x1xf32> to vector<32x256xf32>
    %250 = arith.mulf %248, %249 : vector<32x256xf32>
    %251 = vector.broadcast %174 : vector<32x1xf32> to vector<32x256xf32>
    %252 = arith.addf %250, %251 : vector<32x256xf32>
    %c0_116 = arith.constant 0 : index
    %c0_117 = arith.constant 0 : index
    %253 = vector.load %arg16[%c0_116, %c0_117] : memref<32x96xf32, #tpu.memory_space<vmem>>, vector<32x96xf32>
    %c1_i32_118 = arith.constant 1 : i32
    %254 = tpu.dynamic_rotate %252 by %c1_i32_118 dim 1 : vector<32x256xf32>, i32 -> vector<32x256xf32>
    %255 = tpu.iota {dimensions = array<i32: 1>} : vector<32x256xi32>
    %c-1_i32_119 = arith.constant -1 : i32
    %256 = vector.broadcast %c-1_i32_119 : i32 to vector<32x256xi32>
    %257 = arith.addi %255, %256 : vector<32x256xi32>
    %c0_i32_120 = arith.constant 0 : i32
    %258 = vector.broadcast %c0_i32_120 : i32 to vector<32x256xi32>
    %259 = arith.cmpi sge, %257, %258 : vector<32x256xi32>
    %c-1_i32_121 = arith.constant -1 : i32
    %260 = vector.broadcast %c-1_i32_121 : i32 to vector<32x256xi32>
    %261 = arith.addi %255, %260 : vector<32x256xi32>
    %c256_i32_122 = arith.constant 256 : i32
    %262 = vector.broadcast %c256_i32_122 : i32 to vector<32x256xi32>
    %263 = arith.cmpi slt, %261, %262 : vector<32x256xi32>
    %264 = arith.andi %259, %263 : vector<32x256xi1>
    %cst_123 = arith.constant 0.000000e+00 : f32
    %265 = vector.broadcast %cst_123 : f32 to vector<32x256xf32>
    %266 = arith.select %264, %254, %265 : vector<32x256xi1>, vector<32x256xf32>
    %c255_i32_124 = arith.constant 255 : i32
    %267 = tpu.dynamic_rotate %252 by %c255_i32_124 dim 1 : vector<32x256xf32>, i32 -> vector<32x256xf32>
    %268 = tpu.iota {dimensions = array<i32: 1>} : vector<32x256xi32>
    %c1_i32_125 = arith.constant 1 : i32
    %269 = vector.broadcast %c1_i32_125 : i32 to vector<32x256xi32>
    %270 = arith.addi %268, %269 : vector<32x256xi32>
    %c0_i32_126 = arith.constant 0 : i32
    %271 = vector.broadcast %c0_i32_126 : i32 to vector<32x256xi32>
    %272 = arith.cmpi sge, %270, %271 : vector<32x256xi32>
    %c1_i32_127 = arith.constant 1 : i32
    %273 = vector.broadcast %c1_i32_127 : i32 to vector<32x256xi32>
    %274 = arith.addi %268, %273 : vector<32x256xi32>
    %c256_i32_128 = arith.constant 256 : i32
    %275 = vector.broadcast %c256_i32_128 : i32 to vector<32x256xi32>
    %276 = arith.cmpi slt, %274, %275 : vector<32x256xi32>
    %277 = arith.andi %272, %276 : vector<32x256xi1>
    %cst_129 = arith.constant 0.000000e+00 : f32
    %278 = vector.broadcast %cst_129 : f32 to vector<32x256xf32>
    %279 = arith.select %277, %267, %278 : vector<32x256xi1>, vector<32x256xf32>
    %280 = tpu.concatenate %266, %252, %279 in 0 : vector<32x256xf32>, vector<32x256xf32>, vector<32x256xf32> -> vector<96x256xf32>
    %cst_130 = arith.constant dense<0.000000e+00> : vector<32x256xf32>
    %281 = tpu.matmul %253, %280, %cst_130 {dimension_numbers = #tpu.dot_dimension_numbers<[1], [0], [0], [1], [0, 0, 1, 1], [], []>} : vector<32x96xf32>, vector<96x256xf32>, vector<32x256xf32> -> vector<32x256xf32>
    %c0_131 = arith.constant 0 : index
    %c0_132 = arith.constant 0 : index
    %282 = vector.load %arg17[%c0_131, %c0_132] : memref<32x1xf32, #tpu.memory_space<vmem>>, vector<32x1xf32>
    %283 = vector.broadcast %282 : vector<32x1xf32> to vector<32x256xf32>
    %284 = arith.addf %281, %283 : vector<32x256xf32>
    %cst_133 = arith.constant 0.000000e+00 : f32
    %285 = vector.broadcast %cst_133 : f32 to vector<32x256xf32>
    %286 = arith.maximumf %284, %285 : vector<32x256xf32>
    %287 = arith.addf %286, %252 : vector<32x256xf32>
    %c0_134 = arith.constant 0 : index
    %c0_135 = arith.constant 0 : index
    %288 = vector.load %arg18[%c0_134, %c0_135] : memref<32x1xf32, #tpu.memory_space<vmem>>, vector<32x1xf32>
    %c0_136 = arith.constant 0 : index
    %c0_137 = arith.constant 0 : index
    %289 = vector.load %arg19[%c0_136, %c0_137] : memref<32x1xf32, #tpu.memory_space<vmem>>, vector<32x1xf32>
    %cst_138 = arith.constant dense<0.000000e+00> : vector<256xf32>
    %290 = vector.multi_reduction <add>, %287, %cst_138 [0] : vector<32x256xf32> to vector<256xf32>
    %291 = vector.shape_cast %290 : vector<256xf32> to vector<1x256xf32>
    %cst_139 = arith.constant 3.125000e-02 : f32
    %292 = vector.broadcast %cst_139 : f32 to vector<1x256xf32>
    %293 = arith.mulf %291, %292 : vector<1x256xf32>
    %294 = vector.broadcast %293 : vector<1x256xf32> to vector<32x256xf32>
    %295 = arith.subf %287, %294 : vector<32x256xf32>
    %296 = arith.mulf %295, %295 : vector<32x256xf32>
    %cst_140 = arith.constant dense<0.000000e+00> : vector<256xf32>
    %297 = vector.multi_reduction <add>, %296, %cst_140 [0] : vector<32x256xf32> to vector<256xf32>
    %298 = vector.shape_cast %297 : vector<256xf32> to vector<1x256xf32>
    %cst_141 = arith.constant 3.125000e-02 : f32
    %299 = vector.broadcast %cst_141 : f32 to vector<1x256xf32>
    %300 = arith.mulf %298, %299 : vector<1x256xf32>
    %cst_142 = arith.constant 9.99999974E-6 : f32
    %301 = vector.broadcast %cst_142 : f32 to vector<1x256xf32>
    %302 = arith.addf %300, %301 : vector<1x256xf32>
    %303 = math.rsqrt %302 : vector<1x256xf32>
    %304 = vector.broadcast %303 : vector<1x256xf32> to vector<32x256xf32>
    %305 = arith.mulf %295, %304 : vector<32x256xf32>
    %306 = vector.broadcast %288 : vector<32x1xf32> to vector<32x256xf32>
    %307 = arith.mulf %305, %306 : vector<32x256xf32>
    %308 = vector.broadcast %289 : vector<32x1xf32> to vector<32x256xf32>
    %309 = arith.addf %307, %308 : vector<32x256xf32>
    %c0_143 = arith.constant 0 : index
    %c0_144 = arith.constant 0 : index
    %310 = vector.load %arg20[%c0_143, %c0_144] : memref<32x32xf32, #tpu.memory_space<vmem>>, vector<32x32xf32>
    %cst_145 = arith.constant dense<0.000000e+00> : vector<32x256xf32>
    %311 = tpu.matmul %310, %309, %cst_145 {dimension_numbers = #tpu.dot_dimension_numbers<[1], [0], [0], [1], [0, 0, 1, 1], [], []>} : vector<32x32xf32>, vector<32x256xf32>, vector<32x256xf32> -> vector<32x256xf32>
    %c0_146 = arith.constant 0 : index
    %c0_147 = arith.constant 0 : index
    %312 = vector.load %arg21[%c0_146, %c0_147] : memref<32x1xf32, #tpu.memory_space<vmem>>, vector<32x1xf32>
    %313 = vector.broadcast %312 : vector<32x1xf32> to vector<32x256xf32>
    %314 = arith.addf %311, %313 : vector<32x256xf32>
    %cst_148 = arith.constant 0.000000e+00 : f32
    %315 = vector.broadcast %cst_148 : f32 to vector<32x256xf32>
    %316 = arith.maximumf %314, %315 : vector<32x256xf32>
    %c0_149 = arith.constant 0 : index
    %c0_150 = arith.constant 0 : index
    %317 = vector.load %arg22[%c0_149, %c0_150] : memref<32x32xf32, #tpu.memory_space<vmem>>, vector<32x32xf32>
    %cst_151 = arith.constant dense<0.000000e+00> : vector<32x256xf32>
    %318 = tpu.matmul %317, %316, %cst_151 {dimension_numbers = #tpu.dot_dimension_numbers<[1], [0], [0], [1], [0, 0, 1, 1], [], []>} : vector<32x32xf32>, vector<32x256xf32>, vector<32x256xf32> -> vector<32x256xf32>
    %c0_152 = arith.constant 0 : index
    %c0_153 = arith.constant 0 : index
    %319 = vector.load %arg23[%c0_152, %c0_153] : memref<32x1xf32, #tpu.memory_space<vmem>>, vector<32x1xf32>
    %320 = vector.broadcast %319 : vector<32x1xf32> to vector<32x256xf32>
    %321 = arith.addf %318, %320 : vector<32x256xf32>
    %322 = arith.addf %321, %309 : vector<32x256xf32>
    %c0_154 = arith.constant 0 : index
    %c0_155 = arith.constant 0 : index
    %323 = vector.load %arg24[%c0_154, %c0_155] : memref<32x1xf32, #tpu.memory_space<vmem>>, vector<32x1xf32>
    %c0_156 = arith.constant 0 : index
    %c0_157 = arith.constant 0 : index
    %324 = vector.load %arg25[%c0_156, %c0_157] : memref<32x1xf32, #tpu.memory_space<vmem>>, vector<32x1xf32>
    %cst_158 = arith.constant dense<0.000000e+00> : vector<256xf32>
    %325 = vector.multi_reduction <add>, %322, %cst_158 [0] : vector<32x256xf32> to vector<256xf32>
    %326 = vector.shape_cast %325 : vector<256xf32> to vector<1x256xf32>
    %cst_159 = arith.constant 3.125000e-02 : f32
    %327 = vector.broadcast %cst_159 : f32 to vector<1x256xf32>
    %328 = arith.mulf %326, %327 : vector<1x256xf32>
    %329 = vector.broadcast %328 : vector<1x256xf32> to vector<32x256xf32>
    %330 = arith.subf %322, %329 : vector<32x256xf32>
    %331 = arith.mulf %330, %330 : vector<32x256xf32>
    %cst_160 = arith.constant dense<0.000000e+00> : vector<256xf32>
    %332 = vector.multi_reduction <add>, %331, %cst_160 [0] : vector<32x256xf32> to vector<256xf32>
    %333 = vector.shape_cast %332 : vector<256xf32> to vector<1x256xf32>
    %cst_161 = arith.constant 3.125000e-02 : f32
    %334 = vector.broadcast %cst_161 : f32 to vector<1x256xf32>
    %335 = arith.mulf %333, %334 : vector<1x256xf32>
    %cst_162 = arith.constant 9.99999974E-6 : f32
    %336 = vector.broadcast %cst_162 : f32 to vector<1x256xf32>
    %337 = arith.addf %335, %336 : vector<1x256xf32>
    %338 = math.rsqrt %337 : vector<1x256xf32>
    %339 = vector.broadcast %338 : vector<1x256xf32> to vector<32x256xf32>
    %340 = arith.mulf %330, %339 : vector<32x256xf32>
    %341 = vector.broadcast %323 : vector<32x1xf32> to vector<32x256xf32>
    %342 = arith.mulf %340, %341 : vector<32x256xf32>
    %343 = vector.broadcast %324 : vector<32x1xf32> to vector<32x256xf32>
    %344 = arith.addf %342, %343 : vector<32x256xf32>
    %c0_163 = arith.constant 0 : index
    %c0_164 = arith.constant 0 : index
    %c0_165 = arith.constant 0 : index
    %345 = vector.load %arg26[%c0_163, %c0_164, %c0_165] : memref<1x32x256xf32, #tpu.memory_space<vmem>>, vector<1x32x256xf32>
    %346 = vector.shape_cast %345 : vector<1x32x256xf32> to vector<32x256xf32>
    %347 = vector.shape_cast %344 : vector<32x256xf32> to vector<1x32x256xf32>
    tpu.vector_store %arg26[%c0_163, %c0_164, %c0_165], %347 {strides = array<i32>} : memref<1x32x256xf32, #tpu.memory_space<vmem>>, vector<1x32x256xf32>,
    return
  }
  func.func @transform_0(%arg0: i32) -> (i32, i32, i32) {
    %c0_i32 = arith.constant 0 : i32
    %c0_i32_0 = arith.constant 0 : i32
    %c0_i32_1 = arith.constant 0 : i32
    return %arg0, %c0_i32, %c0_i32_0 : i32, i32, i32
  }
  func.func @transform_1(%arg0: i32) -> (i32, i32) {
    %c0_i32 = arith.constant 0 : i32
    %c0_i32_0 = arith.constant 0 : i32
    %c0_i32_1 = arith.constant 0 : i32
    return %c0_i32, %c0_i32_0 : i32, i32
  }
  func.func @transform_2(%arg0: i32) -> (i32, i32, i32) {
    %c0_i32 = arith.constant 0 : i32
    %c0_i32_0 = arith.constant 0 : i32
    %c0_i32_1 = arith.constant 0 : i32
    return %arg0, %c0_i32, %c0_i32_0 : i32, i32, i32
  }
  func.func @transform_3(%arg0: i32) -> (i32, i32) {
    %c0_i32 = arith.constant 0 : i32
    %c0_i32_0 = arith.constant 0 : i32
    %c0_i32_1 = arith.constant 0 : i32
    return %c0_i32, %c0_i32_0 : i32, i32
  }
  func.func @transform_4(%arg0: i32) -> (i32, i32) {
    %c0_i32 = arith.constant 0 : i32
    %c0_i32_0 = arith.constant 0 : i32
    %c0_i32_1 = arith.constant 0 : i32
    return %c0_i32, %c0_i32_0 : i32, i32
  }
  func.func @transform_5(%arg0: i32) -> (i32, i32) {
    %c0_i32 = arith.constant 0 : i32
    %c0_i32_0 = arith.constant 0 : i32
    %c0_i32_1 = arith.constant 0 : i32
    return %c0_i32, %c0_i32_0 : i32, i32
  }
  func.func @transform_6(%arg0: i32) -> (i32, i32) {
    %c0_i32 = arith.constant 0 : i32
    %c0_i32_0 = arith.constant 0 : i32
    %c0_i32_1 = arith.constant 0 : i32
    return %c0_i32, %c0_i32_0 : i32, i32
  }
  func.func @transform_7(%arg0: i32) -> (i32, i32) {
    %c0_i32 = arith.constant 0 : i32
    %c0_i32_0 = arith.constant 0 : i32
    %c0_i32_1 = arith.constant 0 : i32
    return %c0_i32, %c0_i32_0 : i32, i32
  }
  func.func @transform_8(%arg0: i32) -> (i32, i32) {
    %c0_i32 = arith.constant 0 : i32
    %c0_i32_0 = arith.constant 0 : i32
    %c0_i32_1 = arith.constant 0 : i32
    return %c0_i32, %c0_i32_0 : i32, i32
  }
  func.func @transform_9(%arg0: i32) -> (i32, i32) {
    %c0_i32 = arith.constant 0 : i32
    %c0_i32_0 = arith.constant 0 : i32
    %c0_i32_1 = arith.constant 0 : i32
    return %c0_i32, %c0_i32_0 : i32, i32
  }
  func.func @transform_10(%arg0: i32) -> (i32, i32) {
    %c0_i32 = arith.constant 0 : i32
    %c0_i32_0 = arith.constant 0 : i32
    %c0_i32_1 = arith.constant 0 : i32
    return %c0_i32, %c0_i32_0 : i32, i32
  }
  func.func @transform_11(%arg0: i32) -> (i32, i32) {
    %c0_i32 = arith.constant 0 : i32
    %c0_i32_0 = arith.constant 0 : i32
    %c0_i32_1 = arith.constant 0 : i32
    return %c0_i32, %c0_i32_0 : i32, i32
  }
  func.func @transform_12(%arg0: i32) -> (i32, i32) {
    %c0_i32 = arith.constant 0 : i32
    %c0_i32_0 = arith.constant 0 : i32
    %c0_i32_1 = arith.constant 0 : i32
    return %c0_i32, %c0_i32_0 : i32, i32
  }
  func.func @transform_13(%arg0: i32) -> (i32, i32) {
    %c0_i32 = arith.constant 0 : i32
    %c0_i32_0 = arith.constant 0 : i32
    %c0_i32_1 = arith.constant 0 : i32
    return %c0_i32, %c0_i32_0 : i32, i32
  }
  func.func @transform_14(%arg0: i32) -> (i32, i32) {
    %c0_i32 = arith.constant 0 : i32
    %c0_i32_0 = arith.constant 0 : i32
    %c0_i32_1 = arith.constant 0 : i32
    return %c0_i32, %c0_i32_0 : i32, i32
  }
  func.func @transform_15(%arg0: i32) -> (i32, i32) {
    %c0_i32 = arith.constant 0 : i32
    %c0_i32_0 = arith.constant 0 : i32
    %c0_i32_1 = arith.constant 0 : i32
    return %c0_i32, %c0_i32_0 : i32, i32
  }
  func.func @transform_16(%arg0: i32) -> (i32, i32) {
    %c0_i32 = arith.constant 0 : i32
    %c0_i32_0 = arith.constant 0 : i32
    %c0_i32_1 = arith.constant 0 : i32
    return %c0_i32, %c0_i32_0 : i32, i32
  }
  func.func @transform_17(%arg0: i32) -> (i32, i32) {
    %c0_i32 = arith.constant 0 : i32
    %c0_i32_0 = arith.constant 0 : i32
    %c0_i32_1 = arith.constant 0 : i32
    return %c0_i32, %c0_i32_0 : i32, i32
  }
  func.func @transform_18(%arg0: i32) -> (i32, i32) {
    %c0_i32 = arith.constant 0 : i32
    %c0_i32_0 = arith.constant 0 : i32
    %c0_i32_1 = arith.constant 0 : i32
    return %c0_i32, %c0_i32_0 : i32, i32
  }
  func.func @transform_19(%arg0: i32) -> (i32, i32) {
    %c0_i32 = arith.constant 0 : i32
    %c0_i32_0 = arith.constant 0 : i32
    %c0_i32_1 = arith.constant 0 : i32
    return %c0_i32, %c0_i32_0 : i32, i32
  }
  func.func @transform_20(%arg0: i32) -> (i32, i32) {
    %c0_i32 = arith.constant 0 : i32
    %c0_i32_0 = arith.constant 0 : i32
    %c0_i32_1 = arith.constant 0 : i32
    return %c0_i32, %c0_i32_0 : i32, i32
  }
  func.func @transform_21(%arg0: i32) -> (i32, i32) {
    %c0_i32 = arith.constant 0 : i32
    %c0_i32_0 = arith.constant 0 : i32
    %c0_i32_1 = arith.constant 0 : i32
    return %c0_i32, %c0_i32_0 : i32, i32
  }
  func.func @transform_22(%arg0: i32) -> (i32, i32) {
    %c0_i32 = arith.constant 0 : i32
    %c0_i32_0 = arith.constant 0 : i32
    %c0_i32_1 = arith.constant 0 : i32
    return %c0_i32, %c0_i32_0 : i32, i32
  }
  func.func @transform_23(%arg0: i32) -> (i32, i32) {
    %c0_i32 = arith.constant 0 : i32
    %c0_i32_0 = arith.constant 0 : i32
    %c0_i32_1 = arith.constant 0 : i32
    return %c0_i32, %c0_i32_0 : i32, i32
  }
  func.func @transform_24(%arg0: i32) -> (i32, i32) {
    %c0_i32 = arith.constant 0 : i32
    %c0_i32_0 = arith.constant 0 : i32
    %c0_i32_1 = arith.constant 0 : i32
    return %c0_i32, %c0_i32_0 : i32, i32
  }
  func.func @transform_25(%arg0: i32) -> (i32, i32, i32) {
    %c0_i32 = arith.constant 0 : i32
    %c0_i32_0 = arith.constant 0 : i32
    %c0_i32_1 = arith.constant 0 : i32
    return %arg0, %c0_i32, %c0_i32_0 : i32, i32, i32
  }
}

</mosaic_0001>

<bundles_post_ra>
// kernel: piano_kpm_forward.1
= control target key start
LH: loop header
LB: loop body
LE: loop exit
PB: predicated region body
PF: predicated region fallthrough
CT: control target
= control target key end

     0   :  { %s3656_s0 = inlined_call_operand.vmem [shape: f32[2,8,128], index: 0, kind: input, shape index: {}]   ;;  %s3657_s1 = inlined_call_operand.vmem [shape: f32[128,256], index: 1, kind: input, shape index: {}]   ;;  %s3658_s2 = inlined_call_operand.vmem [shape: f32[2,8,256], index: 2, kind: input, shape index: {}]   ;;  %s3659_s3 = inlined_call_operand.vmem [shape: f32[16,40], index: 3, kind: input, shape index: {}]   ;;  %s3660_s4 = inlined_call_operand.vmem [shape: f32[16,1], index: 4, kind: input, shape index: {}]   ;;  %s3661_s5 = inlined_call_operand.vmem [shape: f32[16,1], index: 5, kind: input, shape index: {}]   ;;  %s3662_s6 = inlined_call_operand.vmem [shape: f32[16,1], index: 6, kind: input, shape index: {}]   ;;  %s3663_s7 = inlined_call_operand.vmem [shape: f32[16,40], index: 7, kind: input, shape index: {}]   ;;  %s3664_s8 = inlined_call_operand.vmem [shape: f32[16,1], index: 8, kind: input, shape index: {}]   ;;  %s3665_s9 = inlined_call_operand.vmem [shape: f32[16,1], index: 9, kind: input, shape index: {}]   ;;  %s3666_s10 = inlined_call_operand.vmem [shape: f32[16,1], index: 10, kind: input, shape index: {}]   ;;  %s3667_s11 = inlined_call_operand.vmem [shape: f32[32,80], index: 11, kind: input, shape index: {}]   ;;  %s3668_s12 = inlined_call_operand.vmem [shape: f32[32,1], index: 12, kind: input, shape index: {}]   ;;  %s3669_s13 = inlined_call_operand.vmem [shape: f32[32,1], index: 13, kind: input, shape index: {}]   ;;  %s3670_s14 = inlined_call_operand.vmem [shape: f32[32,1], index: 14, kind: input, shape index: {}]   ;;  %s3671_s15 = inlined_call_operand.vmem [shape: f32[32,96], index: 15, kind: input, shape index: {}]   ;;  %s3672_s16 = inlined_call_operand.vmem [shape: f32[32,1], index: 16, kind: input, shape index: {}]   ;;  %s3673_s17 = inlined_call_operand.vmem [shape: f32[32,1], index: 17, kind: input, shape index: {}]   ;;  %s3674_s18 = inlined_call_operand.vmem [shape: f32[32,1], index: 18, kind: input, shape index: {}]   ;;  %s3675_s19 = inlined_call_operand.vmem [shape: f32[32,32], index: 19, kind: input, shape index: {}]   ;;  %s3676_s20 = inlined_call_operand.vmem [shape: f32[32,1], index: 20, kind: input, shape index: {}]   ;;  %s3677_s21 = inlined_call_operand.vmem [shape: f32[32,32], index: 21, kind: input, shape index: {}]   ;;  %s3678_s22 = inlined_call_operand.vmem [shape: f32[32,1], index: 22, kind: input, shape index: {}]   ;;  %s3679_s23 = inlined_call_operand.vmem [shape: f32[32,1], index: 23, kind: input, shape index: {}]   ;;  %s3680_s24 = inlined_call_operand.vmem [shape: f32[32,1], index: 24, kind: input, shape index: {}]   ;;  %s3681_s25 = inlined_call_operand.hbm [shape: f32[2,32,256], index: 25, kind: output, shape index: {}]  }
   0x1   :  { %3711 = sst [smem:[#allocation13_spill]] %s3656_s0 }
   0x2   :  { %3712 = sst [smem:[#allocation14_spill]] %s3657_s1 }
   0x3   :  { %3713 = sst [smem:[#allocation15_spill]] %s3658_s2 }
   0x4   :  { %3714 = sst [smem:[#allocation16_spill]] %s3659_s3 }
   0x5   :  { %3715 = sst [smem:[#allocation17_spill]] %s3660_s4 }
   0x6   :  { %3716 = sst [smem:[#allocation18_spill]] %s3661_s5 }
   0x7   :  { %3717 = sst [smem:[#allocation19_spill]] %s3662_s6 }
   0x8   :  { %3718 = sst [smem:[#allocation20_spill]] %s3663_s7 }
   0x9   :  { %3719 = sst [smem:[#allocation21_spill]] %s3664_s8 }
   0xa   :  { %3720 = sst [smem:[#allocation22_spill]] %s3665_s9 }
   0xb   :  { %3721 = sst [smem:[#allocation23_spill]] %s3666_s10 }
   0xc   :  { %3722 = sst [smem:[#allocation24_spill]] %s3667_s11 }
   0xd   :  { %3723 = sst [smem:[#allocation25_spill]] %s3668_s12 }
   0xe   :  { %3724 = sst [smem:[#allocation26_spill]] %s3669_s13 }
   0xf   :  { %3725 = sst [smem:[#allocation27_spill]] %s3670_s14 }
  0x10   :  { %3726 = sst [smem:[#allocation28_spill]] %s3681_s25 }
  0x11   :  { %30 = vsyncpa [#allocation3], 0 }
  0x12   :  { %32 = vsyncpa [#allocation3 + $0x1], 0  ;;  %s2759_s29 = smov 0   ;;  %s2761_s2 = smov 0  }
  0x13   :  { %s2763_s6 = smov 0   ;;  %s2765_s30 = smov 0  }
  0x14 LB: > { %3727 = sst [smem:[#allocation5_spill]] %s2608_s29  ;;  %s2780_s7 = sadd.s32 4294967295, %s2620_s30   ;;  %s2620_s30 = sphi %s2765_s30, %s3766_s30   ;;  %s2616_s6 = sphi %s2763_s6, %s3768_s6   ;;  %s2612_s2 = sphi %s2761_s2, %s3770_s2   ;;  %s2608_s29 = sphi %s2759_s29, %s3769_s29  }
  0x15   : > { %3728 = sst [smem:[#allocation6_spill]] %s2616_s6  ;;  %s2410_s3 = sadd.s32 4294967294, %s2620_s30  }
  0x16   : > { %3729 = sst [smem:[#allocation7_spill]] %s2620_s30  ;;  %s2784_s26 = sadd.s32 1, %s2620_s30  }
  0x17   : > { %3730 = sst [smem:[#allocation8_spill]] %s2780_s7  ;;  %s580_s1 = sadd.s32 1, %s2616_s6 }
  0x18   : > { %3731 = sst [smem:[#allocation9_spill]] %s2784_s26  ;;  %s577_s8 = ssub.s32 %s2620_s30, %s2784_s26 }
  0x19   : > { %p590_p0 = scmp.ne.s32.totalorder %s2616_s6, %s2612_s2  ;;  %p578_p1 = scmp.eq.s32.totalorder %s577_s8, 0 }
  0x1a   : > { %p591_p2 = scmp.eq.s32.totalorder %s2780_s7, 1  ;;  %p596_p3 = scmp.ne.s32.totalorder %s2612_s2, %s2608_s29 }
  0x1b   : > { %p597_p4 = scmp.eq.s32.totalorder %s2410_s3, 1  ;;  %p2413_p7 = scmp.ge.s32.totalorder %s2620_s30, 1 }
  0x1c   : > { %s2795_s27 = scalar_select %p578_p1, %s2616_s6, %s580_s1  }
  0x1d   : > { %p2797_p5 = por %p591_p2, %p590_p0  ;;  %p2801_p6 = por %p597_p4, %p596_p3 }
  0x1e   : > { %3732 = sst [smem:[#allocation10_spill]] %s2795_s27  ;;  %p699_p8 = scmp.lt.s32.totalorder %s2620_s30, 3 }
  0x1f   : > { %s3733_s4 = scalar_select %p2797_p5, 1, 0 }
  0x20   : > { %s3735_s28 = scalar_select %p2801_p6, 1, 0 }
  0x21   : > { %3734 = sst [smem:[#allocation11_spill]] %s3733_s4  ;;  %p700_p9 = pnand %p2413_p7, %p699_p8 }
  0x22   : > { %3736 = sst [smem:[#allocation12_spill]] %s3735_s28  ;;  %p771_p10 = scmp.lt.s32.totalorder (!%p700_p9), %s2780_s7, 1 }
  0x23   : > { %703 = sbr.rel (%p700_p9) target bundleno = 1728 (0x6c0), region = 120  ;;  %s3737_s0 = sld [smem:[#allocation14_spill]] (!%p700_p9) }
  0x24   : > { %s3738_s25 = sld [smem:[#allocation13_spill]] (!%p700_p9)  ;;  %s3704_s4 = smov (!%p700_p9), 127  }
  0x25   : > { %s3739_s9 = sld [smem:[#allocation15_spill]] (!%p700_p9)  ;;  %s3700_s3 = smov (!%p700_p9), 2  }
  0x26   : > { %s3740_s6 = sld [smem:[#allocation17_spill]] (!%p700_p9) }
  0x27   : > { %s3742_s29 = sld [smem:[#allocation21_spill]] (!%p700_p9) }
  0x28   : > { %s2875_s27 = scalar_select %p771_p10, %s2780_s7, 1  ;;  %v865_v37 = vlaneseq  ;;  %v2626_v38 = vmov 0   ;;  %vm942_vm8 = vcmask 326656  }
  0x29   : > { %v811_v0 = vld [vmem:[%s3737_s0 + $0xf0] sm:$0xff]  ;;  %v809_v1 = vld [vmem:[%s3737_s0 + $0xe0] sm:$0xff]  ;;  %v812_v2 = vld [vmem:[%s3737_s0 + $0xf8] sm:$0xff]  ;;  %2535 = vset.pattern.permute.xlu1 %v2626_v38  ;;  %2537 = vset.pattern.permute.xlu0 %v2626_v38  ;;  %s3747_s10 = sld [smem:[#allocation23_spill]] }
  0x2a   : > { %813 = vmatpush.msra.mxu0 %v811_v0  ;;  %v807_v3 = vld [vmem:[%s3737_s0 + $0xd0] sm:$0xff]  ;;  %833 = vmatpush.msra.mxu1 %v812_v2  ;;  %v810_v4 = vld [vmem:[%s3737_s0 + $0xe8] sm:$0xff]  ;;  %v808_v5 = vld [vmem:[%s3737_s0 + $0xd8] sm:$0xff]  ;;  %s2415_s5 = sshll.u32 %s2875_s27, 3  ;;  %v2946_v40 = vand.u32 127, %v865_v37  ;;  %s3749_s30 = sld [smem:[#allocation18_spill]] }
  0x2b   : > { %v805_v6 = vld [vmem:[%s3737_s0 + $0xc0] sm:$0xff]  ;;  %v806_v7 = vld [vmem:[%s3737_s0 + $0xc8] sm:$0xff]  ;;  %v803_v8 = vld [vmem:[%s3737_s0 + $0xb0] sm:$0xff]  ;;  %s774_s7 = scalar_lea.vmem %s3738_s25, %s2415_s5  ;;  %s3702_s25 = smov 1   ;;  %2536 = vset.pattern.permute.xlu2 %v2626_v38 }
  0x2c   : > { %814 = vmatpush.msra.mxu0 %v809_v1  ;;  %834 = vmatpush.msra.mxu1 %v810_v4  ;;  %v804_v9 = vld [vmem:[%s3737_s0 + $0xb8] sm:$0xff]  ;;  %v801_v10 = vld [vmem:[%s3737_s0 + $0xa0] sm:$0xff]  ;;  %v802_v11 = vld [vmem:[%s3737_s0 + $0xa8] sm:$0xff]  ;;  %s2624_s5 = smov 126   ;;  %s3741_s26 = smov %s3740_s6  ;;  %v870_v43 = vadd.s32 128, %v2946_v40  ;;  %vm919_vm0 = vcmp.lt.s32.totalorder %v2946_v40, 126 }
  0x2d   : > { %v799_v12 = vld [vmem:[%s3737_s0 + $0x90] sm:$0xff]  ;;  %v800_v13 = vld [vmem:[%s3737_s0 + $0x98] sm:$0xff]  ;;  %v797_v14 = vld [vmem:[%s3737_s0 + $0x80] sm:$0xff]  ;;  %s3743_s28 = smov %s3742_s29  ;;  %vm902_vm2 = vcmp.lt.s32.totalorder %v2946_v40, 127  ;;  %v2965_v53 = vadd.s32 4294967295, %v2946_v40  ;;  %vm885_vm4 = vcmp.lt.s32.totalorder %v2946_v40, 1 }
  0x2e   : > { %815 = vmatpush.msra.mxu0 %v807_v3  ;;  %835 = vmatpush.msra.mxu1 %v808_v5  ;;  %v798_v15 = vld [vmem:[%s3737_s0 + $0x88] sm:$0xff]  ;;  %v795_v16 = vld [vmem:[%s3737_s0 + $0x70] sm:$0xff]  ;;  %v796_v17 = vld [vmem:[%s3737_s0 + $0x78] sm:$0xff]  ;;  %v2949_v45 = vadd.s32 2, %v870_v43  ;;  %v2954_v47 = vadd.s32 1, %v870_v43  ;;  %v2987_v62 = vadd.s32 4294967294, %v2946_v40 }
  0x2f   : > { %v793_v18 = vld [vmem:[%s3737_s0 + $0x60] sm:$0xff]  ;;  %v794_v19 = vld [vmem:[%s3737_s0 + $0x68] sm:$0xff]  ;;  %v791_v20 = vld [vmem:[%s3737_s0 + $0x50] sm:$0xff]  ;;  %vm890_vm5 = vcmp.ge.s32.totalorder %v2965_v53, 0  ;;  %vm867_vm6 = vcmp.lt.s32.totalorder %v2946_v40, 2  ;;  %s3755_s12 = sld [smem:[#allocation25_spill]] }
  0x30   : > { %816 = vmatpush.msra.mxu0 %v805_v6  ;;  %836 = vmatpush.msra.mxu1 %v806_v7  ;;  %v792_v21 = vld [vmem:[%s3737_s0 + $0x58] sm:$0xff]  ;;  %v789_v22 = vld [vmem:[%s3737_s0 + $0x40] sm:$0xff]  ;;  %v790_v23 = vld [vmem:[%s3737_s0 + $0x48] sm:$0xff]  ;;  %vm927_vm1 = vcmp.lt.s32.totalorder %v2949_v45, 256  ;;  %vm910_vm3 = vcmp.lt.s32.totalorder %v2954_v47, 256  ;;  %vm873_vm7 = vcmp.ge.s32.totalorder %v2987_v62, 0 }
  0x31   : > { %v787_v24 = vld [vmem:[%s3737_s0 + $0x30] sm:$0xff]  ;;  %v788_v25 = vld [vmem:[%s3737_s0 + $0x38] sm:$0xff]  ;;  %v785_v26 = vld [vmem:[%s3737_s0 + $0x20] sm:$0xff]  ;;  %s3756_s13 = sld [smem:[#allocation26_spill]] }
  0x32   : > { %817 = vmatpush.msra.mxu0 %v803_v8  ;;  %837 = vmatpush.msra.mxu1 %v804_v9  ;;  %v786_v27 = vld [vmem:[%s3737_s0 + $0x28] sm:$0xff]  ;;  %v783_v28 = vld [vmem:[%s3737_s0 + $0x10] sm:$0xff]  ;;  %v784_v29 = vld [vmem:[%s3737_s0 + $0x18] sm:$0xff]  ;;  %s3757_s14 = sld [smem:[#allocation27_spill]] }
  0x33   : > { %v781_v30 = vld [vmem:[%s3737_s0] sm:$0xff]  ;;  %v782_v32 = vld [vmem:[%s3737_s0 + $0x8] sm:$0xff]  ;;  %s3758_s11 = sld [smem:[#allocation24_spill]]  ;;  %v1623_v40 = vld [vmem:[%s3671_s15 + $0x18] sm:$0xff] }
  0x34   : > { %818 = vmatpush.msra.mxu0 %v801_v10  ;;  %838 = vmatpush.msra.mxu1 %v802_v11  ;;  %v780_v31 = vld [vmem:[%s774_s7] sm:$0xff]  ;;  %s2487_s7 = sshll.u32 %s2875_s27, 4  ;;  %v1098_v46 = vld [vmem:[%s3742_s29 + $0x8] sm:$0xff]  ;;  %s3744_s27 = sld [smem:[#allocation22_spill]] }
  0x35   : > { %s779_s8 = scalar_lea.vmem %s3739_s9, %s2487_s7  ;;  %v855_v39 = vld [vmem:[%s3740_s6] sm:$0xff]  ;;  %v856_v1 = vld [vmem:[%s3741_s26 + $0x8] sm:$0xff]  ;;  %s3745_s6 = sld [smem:[#allocation16_spill]] }
  0x36   : > { %819 = vmatpush.msra.mxu0 %v799_v12  ;;  %839 = vmatpush.msra.mxu1 %v800_v13  ;;  %v2921_v35 = vld [vmem:[%s779_s8 + $0x8] sm:$0xff]  ;;  %v2923_v36 = vld [vmem:[%s779_s8] sm:$0xff]  ;;  %s3748_s8 = sld [smem:[#allocation19_spill]]  ;;  %s3750_s7 = smov %s3749_s30 }
  0x37   : > { %v1097_v0 = vld [vmem:[%s3743_s28] sm:$0xff]  ;;  %s3752_s29 = smov 127   ;;  %s3753_s9 = smov 1  }
  0x38   : > { %820 = vmatpush.msra.mxu0 %v797_v14  ;;  %840 = vmatpush.msra.mxu1 %v798_v15  ;;  %v1101_v9 = vld [vmem:[%s3747_s10] sm:$0xff]  ;;  %v858_v14 = vld [vmem:[%s3749_s30 + $0x8] sm:$0xff]  ;;  %s3759_s1 = sld [smem:[#allocation8_spill]] }
  0x39   : > { %v1302_v62 = vld [vmem:[%s3758_s11 + $0x18] sm:$0xff]  ;;  %s3760_s30 = sld [smem:[#allocation28_spill]] }
  0x3a   : > { %821 = vmatpush.msra.mxu0 %v795_v16  ;;  %841 = vmatpush.msra.mxu1 %v796_v17  ;;  %v1100_v56 = vld [vmem:[%s3744_s27 + $0x8] sm:$0xff]  ;;  %v1099_v63 = vld [vmem:[%s3744_s27] sm:$0xff] }
  0x3b   : > { %v853_v4 = vld [vmem:[%s3745_s6] sm:$0xff] }
  0x3c   : > { %822 = vmatpush.msra.mxu0 %v793_v18  ;;  %842 = vmatpush.msra.mxu1 %v794_v19  ;;  %v860_v10 = vld [vmem:[%s3748_s8 + $0x8] sm:$0xff] }
  0x3e   : > { %823 = vmatpush.msra.mxu0 %v791_v20  ;;  %843 = vmatpush.msra.mxu1 %v792_v21  ;;  %v859_v20 = vld [vmem:[%s3748_s8] sm:$0xff] }
  0x3f   : > { %v857_v21 = vld [vmem:[%s3750_s7] sm:$0xff]  ;;  %s3761_s0 = smov %s3760_s30 }
  0x40   : > { %824 = vmatpush.msra.mxu0 %v789_v22  ;;  %844 = vmatpush.msra.mxu1 %v790_v23 }
  0x42   : > { %825 = vmatpush.msra.mxu0 %v787_v24  ;;  %845 = vmatpush.msra.mxu1 %v788_v25 }
  0x44   : > { %826 = vmatpush.msra.mxu0 %v785_v26  ;;  %846 = vmatpush.msra.mxu1 %v786_v27  ;;  %v1102_v27 = vld [vmem:[%s3747_s10 + $0x8] sm:$0xff] }
  0x46   : > { %827 = vmatpush.msra.mxu0 %v783_v28  ;;  %847 = vmatpush.msra.mxu1 %v784_v29 }
  0x48   : > { %828 = vmatpush.msra.mxu0 %v781_v30  ;;  %848 = vmatpush.msra.mxu1 %v782_v32 }
  0x49   : > { %829 = vmatmul.f32.vlgmr.msra.gmra.mxu0 %v780_v31  ;;  %849 = vmatmul.f32.vlgmr.msra.gmra.mxu1 %v780_v31 }
  0xc6   : > { %v830_v33 = vpop.f32.mrf.mxu0  ;;  %v850_v34 = vpop.f32.mrf.mxu1 }
  0xc7   : > { %881 = vrot.lane.b32.xlu2 %v830_v33, %s3702_s25  ;;  %898 = vrot.lane.b32.xlu1 %v830_v33, %s3704_s4 }
  0xc8   : > { %915 = vrot.lane.b32.xlu0 %v830_v33, %s2624_s5 }
  0xcf   : > { %883 = vrot.lane.b32.xlu2 %v850_v34, %s3702_s25  ;;  %900 = vrot.lane.b32.xlu1 %v850_v34, %s3704_s4 }
  0xd0   : > { %917 = vrot.lane.b32.xlu0 %v850_v34, %s2624_s5 }
  0xd7   : > { %863 = vrot.lane.b32.xlu1 %v850_v34, %s3700_s3  ;;  %1127 = vrot.lane.b32.xlu2 %v2923_v36, %s2624_s5 }
  0xd8   : > { %1129 = vrot.lane.b32.xlu0 %v2921_v35, %s2624_s5 }
  0xdf   : > { %1119 = vrot.lane.b32.xlu1 %v2923_v36, %s3704_s4  ;;  %1121 = vrot.lane.b32.xlu2 %v2921_v35, %s3704_s4  ;;  %s3751_s4 = sld [smem:[#allocation20_spill]] }
  0xe0   : > { %861 = vrot.lane.b32.xlu0 %v830_v33, %s3700_s3 }
  0xe5   : > { %v1095_v24 = vld [vmem:[%s3751_s4] sm:$0xff]  ;;  %v1096_v28 = vld [vmem:[%s3751_s4 + $0x8] sm:$0xff] }
  0xe7   : > { %1113 = vrot.lane.b32.xlu1 %v2921_v35, %s3702_s25  ;;  %1103 = vrot.lane.b32.xlu2 %v2923_v36, %s3700_s3 }
  0xe8   : > { %1111 = vrot.lane.b32.xlu0 %v2923_v36, %s3702_s25 }
  0xef   : > { %934 = vperm.xlu1 %2535, %v855_v39   ;;  %939 = vperm.xlu2 %2536, %v856_v1  }
  0xf0   : > { %1105 = vrot.lane.b32.xlu0 %v2921_v35, %s3700_s3  ;;  %s3746_s3 = smov %s3745_s6  ;;  %s768_s6 = sand.u32 1, %s2612_s2  }
  0xf1   : > { %v854_v17 = vld [vmem:[%s3746_s3 + $0x8] sm:$0xff]  ;;  %s2414_s25 = sshll.u32 %s768_s6, 6 }
  0xf2   : > { %s770_s4 = scalar_lea.vmem [#allocation2], %s2414_s25  ;;  %s2321_s25 = scalar_lea.sflag [#allocation3], %s768_s6 }
  0xf3   : > { %s2333_s8 = sshll.u32 %s770_s4, 4  ;;  %s2334_s8 = int_to_ptr.vmem [resolvable:$true] %s2333_s8 }
  0xf7   : > { %1142 = vperm.xlu1 %2535, %v1098_v46   ;;  %1072 = vperm.xlu2 %2536, %v858_v14  }
  0xf8   : > { %1137 = vperm.xlu0 %2537, %v1097_v0  }
  0xff   : > { %1274 = vperm.xlu1 %2535, %v1100_v56   ;;  %1067 = vperm.xlu2 %2536, %v857_v21  }
 0x100   : > { %1086 = vperm.xlu0 %2537, %v860_v10  }
 0x107   : > { %1269 = vperm.xlu1 %2535, %v1099_v63   ;;  %1288 = vperm.xlu2 %2536, %v1102_v27  }
 0x108   : > { %1081 = vperm.xlu0 %2537, %v859_v20  }
 0x10f   : > { %1283 = vperm.xlu1 %2535, %v1101_v9  }
 0x121   : > { %v882_v41 = vpop.permute.xlu2 %881 }
 0x129   : > { %v884_v49 = vpop.permute.xlu2 %883 }
 0x12a   : > { %v887_v58 = vsel %vm885_vm4, %v884_v49, %v882_v41  ;;  %v886_v59 = vsel %vm885_vm4, %v882_v41, %v884_v49 }
 0x131   : > { %v1128_v60 = vpop.permute.xlu2 %1127 }
 0x139   : > { %v899_v42 = vpop.permute.xlu1 %898  ;;  %v1122_v5 = vpop.permute.xlu2 %1121 }
 0x13a   : > { %v916_v44 = vpop.permute.xlu0 %915 }
 0x141   : > { %v901_v48 = vpop.permute.xlu1 %900  ;;  %v1104_v22 = vpop.permute.xlu2 %1103 }
 0x142   : > { %v918_v50 = vpop.permute.xlu0 %917  ;;  %v903_v54 = vsel %vm902_vm2, %v899_v42, %v901_v48  ;;  %v904_v55 = vsel %vm902_vm2, %v901_v48, %v899_v42 }
 0x143   : > { %v920_v51 = vsel %vm919_vm0, %v916_v44, %v918_v50  ;;  %v921_v52 = vsel %vm919_vm0, %v918_v50, %v916_v44 }
 0x144   : > { %960 = vmatpush.msra.mxu2 %v920_v51  ;;  %2422 = vmatpush.msk.msra.mxu3 %vm927_vm1, %v921_v52 }
 0x146   : > { %961 = vmatpush.msra.mxu2 %v903_v54  ;;  %2423 = vmatpush.msk.msra.mxu3 %vm910_vm3, %v904_v55 }
 0x148   : > { %962 = vmatpush.msra.mxu2 %v830_v33  ;;  %985 = vmatpush.msra.mxu3 %v850_v34 }
 0x149   : > { %v864_v57 = vpop.permute.xlu1 %863  ;;  %v940_v32 = vpop.permute.xlu2 %939 }
 0x14a   : > { %2418 = vmatpush.msk.msra.mxu2 %vm890_vm5, %v887_v58  ;;  %986 = vmatpush.msra.mxu3 %v886_v59  ;;  %v1130_v61 = vpop.permute.xlu0 %1129 }
 0x14b   : > { %v1131_v8 = vsel %vm919_vm0, %v1128_v60, %v1130_v61  ;;  %v1132_v11 = vsel %vm919_vm0, %v1130_v61, %v1128_v60 }
 0x151   : > { %v1120_v2 = vpop.permute.xlu1 %1119 }
 0x152   : > { %v862_v3 = vpop.permute.xlu0 %861  ;;  %v1123_v12 = vsel %vm902_vm2, %v1120_v2, %v1122_v5  ;;  %v1124_v13 = vsel %vm902_vm2, %v1122_v5, %v1120_v2 }
 0x153   : > { %v869_v6 = vsel %vm867_vm6, %v864_v57, %v862_v3  ;;  %v868_v7 = vsel %vm867_vm6, %v862_v3, %v864_v57 }
 0x154   : > { %2419 = vmatpush.msk.msra.mxu2 %vm873_vm7, %v869_v6  ;;  %987 = vmatpush.msra.mxu3 %v868_v7 }
 0x155   : > { %2420 = vmatmul.msk.f32.vlgmr.msra.gmra.mxu2 %vm942_vm8, %v853_v4  ;;  %2424 = vmatmul.msk.f32.vlgmr.msra.gmra.mxu3 %vm942_vm8, %v853_v4 }
 0x156   : > { %1162 = vmatpush.msrb.mxu2 %v1131_v8  ;;  %2430 = vmatpush.msk.msrb.mxu3 %vm927_vm1, %v1132_v11 }
 0x158   : > { %1163 = vmatpush.msrb.mxu2 %v1123_v12  ;;  %2431 = vmatpush.msk.msrb.mxu3 %vm910_vm3, %v1124_v13 }
 0x159   : > { %v1114_v15 = vpop.permute.xlu1 %1113 }
 0x15a   : > { %1164 = vmatpush.msrb.mxu2 %v2923_v36  ;;  %1187 = vmatpush.msrb.mxu3 %v2921_v35  ;;  %v1112_v16 = vpop.permute.xlu0 %1111 }
 0x15b   : > { %v1116_v18 = vsel %vm885_vm4, %v1114_v15, %v1112_v16  ;;  %v1115_v19 = vsel %vm885_vm4, %v1112_v16, %v1114_v15 }
 0x15c   : > { %2426 = vmatpush.msk.msrb.mxu2 %vm890_vm5, %v1116_v18  ;;  %1188 = vmatpush.msrb.mxu3 %v1115_v19 }
 0x15d   : > { %2421 = vmatmul.msk.f32.gmra.mxu2 %vm942_vm8, %v854_v17  ;;  %2425 = vmatmul.msk.f32.gmra.mxu3 %vm942_vm8, %v854_v17 }
 0x161   : > { %v935_v31 = vpop.permute.xlu1 %934 }
 0x162   : > { %v1106_v23 = vpop.permute.xlu0 %1105 }
 0x163   : > { %v1108_v25 = vsel %vm867_vm6, %v1106_v23, %v1104_v22  ;;  %v1107_v26 = vsel %vm867_vm6, %v1104_v22, %v1106_v23 }
 0x164   : > { %2427 = vmatpush.msk.msrb.mxu2 %vm873_vm7, %v1108_v25  ;;  %1189 = vmatpush.msrb.mxu3 %v1107_v26 }
 0x165   : > { %2428 = vmatmul.msk.f32.vlgmr.msrb.gmra.mxu2 %vm942_vm8, %v1095_v24  ;;  %2432 = vmatmul.msk.f32.vlgmr.msrb.gmra.mxu3 %vm942_vm8, %v1095_v24 }
 0x169   : > { %v1143_v59 = vpop.permute.xlu1 %1142 }
 0x16a   : > { %v1138_v63 = vpop.permute.xlu0 %1137 }
 0x16d   : > { %2429 = vmatmul.msk.f32.gmra.mxu2 %vm942_vm8, %v1096_v28  ;;  %2433 = vmatmul.msk.f32.gmra.mxu3 %vm942_vm8, %v1096_v28 }
 0x1d8   : > { %v966_v29 = vpop.f32.mrf.mxu2  ;;  %v989_v30 = vpop.f32.mrf.mxu3 }
 0x1d9   : > { %v967_v33 = vadd.f32 %v966_v29, %v935_v31  ;;  %v990_v34 = vadd.f32 %v989_v30, %v935_v31 }
 0x1db   : > { %v995_v39 = vmax.f32 %v967_v33, 0.0  ;;  %v996_v41 = vmax.f32 %v990_v34, 0.0 }
 0x1e0   : > { %v969_v35 = vpop.f32.mrf.mxu2  ;;  %v992_v36 = vpop.f32.mrf.mxu3 }
 0x1e1   : > { %v970_v37 = vadd.f32 %v969_v35, %v940_v32  ;;  %v993_v38 = vadd.f32 %v992_v36, %v940_v32 }
 0x1e3   : > { %v997_v42 = vmax.f32 %v970_v37, 0.0  ;;  %v998_v43 = vmax.f32 %v993_v38, 0.0 }
 0x1e5   : > { %v999_v44 = vadd.f32 %v997_v42, %v995_v39  ;;  %v1006_v46 = vadd.f32 %v998_v43, %v996_v41 }
 0x1e7   : > { %v1000_v48 = vrot.slane %v999_v44, 4  ;;  %v1007_v49 = vrot.slane %v1006_v46, 4 }
 0x1e8   : > { %v1168_v50 = vpop.f32.mrf.mxu2  ;;  %v1191_v51 = vpop.f32.mrf.mxu3 }
 0x1e9   : > { %v1001_v52 = vadd.f32 %v1000_v48, %v999_v44  ;;  %v1008_v54 = vadd.f32 %v1007_v49, %v1006_v46  ;;  %v1169_v0 = vadd.f32 %v1168_v50, %v1138_v63  ;;  %v1192_v1 = vadd.f32 %v1191_v51, %v1138_v63 }
 0x1eb   : > { %v1002_v55 = vrot.slane %v1001_v52, 2  ;;  %v1009_v56 = vrot.slane %v1008_v54, 2  ;;  %v1197_v12 = vmax.f32 %v1169_v0, 0.0  ;;  %v1198_v13 = vmax.f32 %v1192_v1, 0.0 }
 0x1ed   : > { %v1003_v57 = vadd.f32 %v1002_v55, %v1001_v52  ;;  %v1010_v58 = vadd.f32 %v1009_v56, %v1008_v54 }
 0x1ef   : > { %v1004_v60 = vrot.slane %v1003_v57, 1  ;;  %v1011_v61 = vrot.slane %v1010_v58, 1 }
 0x1f0   : > { %v1171_v2 = vpop.f32.mrf.mxu2  ;;  %v1194_v3 = vpop.f32.mrf.mxu3 }
 0x1f1   : > { %v1005_v4 = vadd.f32 %v1004_v60, %v1003_v57  ;;  %v1012_v5 = vadd.f32 %v1011_v61, %v1010_v58  ;;  %v1172_v6 = vadd.f32 %v1171_v2, %v1143_v59  ;;  %v1195_v7 = vadd.f32 %v1194_v3, %v1143_v59 }
 0x1f3   : > { %v1013_v8 = vmul.f32 0.0625, %v1005_v4  ;;  %v1014_v9 = vmul.f32 0.0625, %v1012_v5  ;;  %v1199_v10 = vmax.f32 %v1172_v6, 0.0  ;;  %v1200_v11 = vmax.f32 %v1195_v7, 0.0 }
 0x1f5   : > { %v3070_v14 = vsub.f32 %v997_v42, %v1013_v8  ;;  %v3072_v15 = vsub.f32 %v998_v43, %v1014_v9  ;;  %v3074_v16 = vsub.f32 %v995_v39, %v1013_v8  ;;  %v3076_v17 = vsub.f32 %v996_v41, %v1014_v9 }
 0x1f6   : > { %v1201_v18 = vadd.f32 %v1199_v10, %v1197_v12  ;;  %v1208_v19 = vadd.f32 %v1200_v11, %v1198_v13 }
 0x1f7   : > { %v1021_v20 = vmul.f32 %v3070_v14, %v3070_v14  ;;  %v1022_v21 = vmul.f32 %v3072_v15, %v3072_v15  ;;  %v1019_v22 = vmul.f32 %v3074_v16, %v3074_v16  ;;  %v1020_v23 = vmul.f32 %v3076_v17, %v3076_v17 }
 0x1f8   : > { %v1202_v24 = vrot.slane %v1201_v18, 4  ;;  %v1209_v25 = vrot.slane %v1208_v19, 4 }
 0x1f9   : > { %v1023_v26 = vadd.f32 %v1021_v20, %v1019_v22  ;;  %v1030_v27 = vadd.f32 %v1022_v21, %v1020_v23 }
 0x1fa   : > { %v1203_v28 = vadd.f32 %v1202_v24, %v1201_v18  ;;  %v1210_v29 = vadd.f32 %v1209_v25, %v1208_v19 }
 0x1fb   : > { %v1024_v30 = vrot.slane %v1023_v26, 4  ;;  %v1031_v31 = vrot.slane %v1030_v27, 4 }
 0x1fc   : > { %v1204_v32 = vrot.slane %v1203_v28, 2  ;;  %v1211_v33 = vrot.slane %v1210_v29, 2 }
 0x1fd   : > { %v1025_v34 = vadd.f32 %v1024_v30, %v1023_v26  ;;  %v1032_v35 = vadd.f32 %v1031_v31, %v1030_v27 }
 0x1fe   : > { %v1205_v36 = vadd.f32 %v1204_v32, %v1203_v28  ;;  %v1212_v37 = vadd.f32 %v1211_v33, %v1210_v29 }
 0x1ff   : > { %v1026_v38 = vrot.slane %v1025_v34, 2  ;;  %v1033_v39 = vrot.slane %v1032_v35, 2 }
 0x200   : > { %v1206_v41 = vrot.slane %v1205_v36, 1  ;;  %v1213_v42 = vrot.slane %v1212_v37, 1 }
 0x201   : > { %v1027_v43 = vadd.f32 %v1026_v38, %v1025_v34  ;;  %v1034_v44 = vadd.f32 %v1033_v39, %v1032_v35  ;;  %v1275_v34 = vpop.permute.xlu1 %1274 }
 0x202   : > { %v1207_v46 = vadd.f32 %v1206_v41, %v1205_v36  ;;  %v1214_v48 = vadd.f32 %v1213_v42, %v1212_v37  ;;  %v1073_v36 = vpop.permute.xlu2 %1072 }
 0x203   : > { %v1028_v49 = vrot.slane %v1027_v43, 1  ;;  %v1035_v50 = vrot.slane %v1034_v44, 1 }
 0x204   : > { %v1215_v51 = vmul.f32 0.0625, %v1207_v46  ;;  %v1216_v52 = vmul.f32 0.0625, %v1214_v48 }
 0x205   : > { %v1029_v54 = vadd.f32 %v1028_v49, %v1027_v43  ;;  %v1036_v55 = vadd.f32 %v1035_v50, %v1034_v44 }
 0x206   : > { %v3086_v56 = vsub.f32 %v1197_v12, %v1215_v51  ;;  %v3088_v57 = vsub.f32 %v1199_v10, %v1215_v51  ;;  %v3090_v58 = vsub.f32 %v1198_v13, %v1216_v52  ;;  %v3092_v59 = vsub.f32 %v1200_v11, %v1216_v52 }
 0x207   : > { %v1037_v60 = vmul.f32 0.0625, %v1029_v54  ;;  %v1038_v61 = vmul.f32 0.0625, %v1036_v55  ;;  %v1087_v54 = vpop.permute.xlu0 %1086 }
 0x208   : > { %v1221_v63 = vmul.f32 %v3086_v56, %v3086_v56  ;;  %v1223_v0 = vmul.f32 %v3088_v57, %v3088_v57  ;;  %v1222_v1 = vmul.f32 %v3090_v58, %v3090_v58  ;;  %v1224_v2 = vmul.f32 %v3092_v59, %v3092_v59 }
 0x209   : > { %v1039_v3 = vadd.f32 1e-05, %v1037_v60  ;;  %v1040_v4 = vadd.f32 1e-05, %v1038_v61  ;;  %v1270_v49 = vpop.permute.xlu1 %1269 }
 0x20a   : > { %v1225_v5 = vadd.f32 %v1223_v0, %v1221_v63  ;;  %v1232_v6 = vadd.f32 %v1224_v2, %v1222_v1  ;;  %v1068_v52 = vpop.permute.xlu2 %1067 }
 0x20b   : > { %2538 = vrsqrt.f32 %v1039_v3  ;;  %vm1047_vm10 = vweird.f32 %v1039_v3  ;;  %vm1057_vm13 = vweird.f32 %v1040_v4 }
 0x20c   : > { %2540 = vrsqrt.f32 %v1040_v4  ;;  %v1226_v7 = vrot.slane %v1225_v5, 4  ;;  %v1233_v8 = vrot.slane %v1232_v6, 4 }
 0x20e   : > { %v1227_v9 = vadd.f32 %v1226_v7, %v1225_v5  ;;  %v1234_v10 = vadd.f32 %v1233_v8, %v1232_v6 }
 0x210   : > { %v1228_v11 = vrot.slane %v1227_v9, 2  ;;  %v1235_v12 = vrot.slane %v1234_v10, 2 }
 0x211   : > { %v2539_v13 = vpop.eup %2538 }
 0x212   : > { %v2541_v18 = vpop.eup %2540  ;;  %v1042_v19 = vmul.f32 %v2539_v13, %v1039_v3  ;;  %v1229_v20 = vadd.f32 %v1228_v11, %v1227_v9  ;;  %v1236_v21 = vadd.f32 %v1235_v12, %v1234_v10  ;;  %vm1048_vm9 = vweird.f32 %v2539_v13  ;;  %v1284_v12 = vpop.permute.xlu1 %1283 }
 0x213   : > { %v1052_v22 = vmul.f32 %v2541_v18, %v1040_v4  ;;  %vm1058_vm11 = vweird.f32 %v2541_v18  ;;  %vm1049_vm12 = vmor %vm1047_vm10, %vm1048_vm9 }
 0x214   : > { %v1230_v23 = vrot.slane %v1229_v20, 1  ;;  %v1237_v24 = vrot.slane %v1236_v21, 1  ;;  %v1043_v25 = vmul.f32 %v2539_v13, %v1042_v19  ;;  %vm1059_vm14 = vmor %vm1057_vm13, %vm1058_vm11 }
 0x215   : > { %v1053_v28 = vmul.f32 %v2541_v18, %v1052_v22  ;;  %v1082_v22 = vpop.permute.xlu0 %1081 }
 0x216   : > { %v1231_v26 = vadd.f32 %v1230_v23, %v1229_v20  ;;  %v1238_v27 = vadd.f32 %v1237_v24, %v1236_v21  ;;  %v1044_v31 = vmul.f32 0.5, %v1043_v25  ;;  %v1289_v20 = vpop.permute.xlu2 %1288 }
 0x217   : > { %v1054_v35 = vmul.f32 0.5, %v1053_v28 }
 0x218   : > { %v1239_v29 = vmul.f32 0.0625, %v1231_v26  ;;  %v1240_v30 = vmul.f32 0.0625, %v1238_v27  ;;  %v1045_v37 = vsub.f32 1.5, %v1044_v31 }
 0x219   : > { %v1055_v38 = vsub.f32 1.5, %v1054_v35  ;;  %v1310_v35 = vld [vmem:[%s3756_s13 + $0x18] sm:$0xff] }
 0x21a   : > { %v1241_v32 = vadd.f32 1e-05, %v1239_v29  ;;  %v1242_v33 = vadd.f32 1e-05, %v1240_v30  ;;  %v1046_v41 = vmul.f32 %v2539_v13, %v1045_v37  ;;  %v1309_v37 = vld [vmem:[%s3756_s13 + $0x10] sm:$0xff] }
 0x21b   : > { %v1056_v44 = vmul.f32 %v2541_v18, %v1055_v38  ;;  %v1308_v38 = vld [vmem:[%s3756_s13 + $0x8] sm:$0xff] }
 0x21c   : > { %2542 = vrsqrt.f32 %v1241_v32  ;;  %v1050_v50 = vsel %vm1049_vm12, %v2539_v13, %v1046_v41  ;;  %vm1249_vm9 = vweird.f32 %v1241_v32  ;;  %vm1259_vm12 = vweird.f32 %v1242_v33  ;;  %v1313_v41 = vld [vmem:[%s3757_s14 + $0x10] sm:$0xff] }
 0x21d   : > { %2544 = vrsqrt.f32 %v1242_v33  ;;  %v1060_v60 = vsel %vm1059_vm14, %v2541_v18, %v1056_v44  ;;  %v1061_v63 = vmul.f32 %v1050_v50, %v3074_v16  ;;  %v1063_v1 = vmul.f32 %v1050_v50, %v3070_v14  ;;  %v1311_v44 = vld [vmem:[%s3757_s14] sm:$0xff] }
 0x21e   : > { %v1064_v3 = vmul.f32 %v1060_v60, %v3072_v15  ;;  %v1062_v19 = vmul.f32 %v1060_v60, %v3076_v17 }
 0x21f   : > { %v1075_v6 = vmul.f32 %v1068_v52, %v1061_v63  ;;  %v1077_v8 = vmul.f32 %v1073_v36, %v1063_v1 }
 0x220   : > { %v1078_v11 = vmul.f32 %v1073_v36, %v1064_v3  ;;  %v1306_v36 = vld [vmem:[%s3755_s12 + $0x18] sm:$0xff] }
 0x221   : > { %v1091_v23 = vadd.f32 %v1087_v54, %v1077_v8 }
 0x222   : > { %v2543_v39 = vpop.eup %2542  ;;  %v1092_v26 = vadd.f32 %v1087_v54, %v1078_v11 }
 0x223   : > { %v2545_v42 = vpop.eup %2544  ;;  %v1244_v43 = vmul.f32 %v2543_v39, %v1241_v32  ;;  %vm1250_vm15 = vweird.f32 %v2543_v39  ;;  %v1304_v32 = vld [vmem:[%s3755_s12 + $0x8] sm:$0xff] }
 0x224   : > { %v1254_v46 = vmul.f32 %v2545_v42, %v1242_v33  ;;  %vm1260_vm8 = vweird.f32 %v2545_v42  ;;  %vm1251_vm10 = vmor %vm1249_vm9, %vm1250_vm15  ;;  %v1303_v33 = vld [vmem:[%s3755_s12] sm:$0xff] }
 0x225   : > { %v1245_v48 = vmul.f32 %v2543_v39, %v1244_v43  ;;  %vm1261_vm11 = vmor %vm1259_vm12, %vm1260_vm8  ;;  %v1307_v43 = vld [vmem:[%s3756_s13] sm:$0xff]  ;;  %vm1977_vm12 = vcmask 261120  }
 0x226   : > { %v1255_v51 = vmul.f32 %v2545_v42, %v1254_v46 }
 0x227   : > { %v1246_v55 = vmul.f32 0.5, %v1245_v48 }
 0x228   : > { %v1256_v61 = vmul.f32 0.5, %v1255_v51 }
 0x229   : > { %v1247_v0 = vsub.f32 1.5, %v1246_v55 }
 0x22a   : > { %v1257_v2 = vsub.f32 1.5, %v1256_v61 }
 0x22b   : > { %v1248_v5 = vmul.f32 %v2543_v39, %v1247_v0 }
 0x22c   : > { %v1258_v4 = vmul.f32 %v2545_v42, %v1257_v2 }
 0x22d   : > { %v1252_v7 = vsel %vm1251_vm10, %v2543_v39, %v1248_v5  ;;  %v1314_v39 = vld [vmem:[%s3757_s14 + $0x18] sm:$0xff] }
 0x22e   : > { %v1263_v9 = vmul.f32 %v1252_v7, %v3086_v56  ;;  %v1265_v16 = vmul.f32 %v1252_v7, %v3088_v57  ;;  %v1262_v10 = vsel %vm1261_vm11, %v2545_v42, %v1258_v4  ;;  %v1089_v56 = vadd.f32 %v1082_v22, %v1075_v6  ;;  %v1312_v42 = vld [vmem:[%s3757_s14 + $0x8] sm:$0xff] }
 0x22f   : > { %v1266_v14 = vmul.f32 %v1262_v10, %v3092_v59  ;;  %v1264_v15 = vmul.f32 %v1262_v10, %v3090_v58  ;;  %v1076_v58 = vmul.f32 %v1068_v52, %v1062_v19  ;;  %v1299_v19 = vld [vmem:[%s3758_s11] sm:$0xff] }
 0x230   : > { %v1279_v13 = vmul.f32 %v1275_v34, %v1265_v16  ;;  %v1277_v18 = vmul.f32 %v1270_v49, %v1263_v9 }
 0x231   : > { %v1280_v21 = vmul.f32 %v1275_v34, %v1266_v14  ;;  %v1278_v28 = vmul.f32 %v1270_v49, %v1264_v15  ;;  %v1090_v30 = vadd.f32 %v1082_v22, %v1076_v58  ;;  %v1305_v34 = vld [vmem:[%s3755_s12 + $0x10] sm:$0xff]  ;;  %v1300_v22 = vld [vmem:[%s3758_s11 + $0x8] sm:$0xff] }
 0x232   : > { %v1293_v24 = vadd.f32 %v1289_v20, %v1279_v13  ;;  %v1291_v25 = vadd.f32 %v1284_v12, %v1277_v18 }
 0x233   : > { %v1294_v57 = vadd.f32 %v1289_v20, %v1280_v21  ;;  %v1292_v17 = vadd.f32 %v1284_v12, %v1278_v28 }
 0x234   : > { %v3110_v27 = vadd.f32 %v1293_v24, %v1091_v23  ;;  %v3112_v59 = vadd.f32 %v1291_v25, %v1089_v56  ;;  %v1301_v23 = vld [vmem:[%s3758_s11 + $0x10] sm:$0xff] }
 0x235   : > { %v3114_v29 = vadd.f32 %v1294_v57, %v1092_v26  ;;  %v3122_v31 = vadd.f32 %v1292_v17, %v1090_v30 }
 0x236   : > { %1365 = vrot.lane.b32.xlu2 %v3110_v27, %s2624_s5  ;;  %1363 = vrot.lane.b32.xlu1 %v3112_v59, %s2624_s5 }
 0x237   : > { %1369 = vrot.lane.b32.xlu0 %v3114_v29, %s2624_s5 }
 0x23e   : > { %1367 = vrot.lane.b32.xlu2 %v3122_v31, %s2624_s5  ;;  %1353 = vrot.lane.b32.xlu1 %v3114_v29, %s3752_s29  ;;  %s3754_s5 = smov 2  }
 0x23f   : > { %1349 = vrot.lane.b32.xlu0 %v3110_v27, %s3752_s29 }
 0x246   : > { %1347 = vrot.lane.b32.xlu2 %v3112_v59, %s3752_s29  ;;  %1333 = vrot.lane.b32.xlu1 %v3110_v27, %s3753_s9 }
 0x247   : > { %1351 = vrot.lane.b32.xlu0 %v3122_v31, %s3752_s29 }
 0x24e   : > { %1337 = vrot.lane.b32.xlu2 %v3114_v29, %s3753_s9  ;;  %1335 = vrot.lane.b32.xlu1 %v3122_v31, %s3753_s9 }
 0x24f   : > { %1331 = vrot.lane.b32.xlu0 %v3112_v59, %s3753_s9 }
 0x256   : > { %1317 = vrot.lane.b32.xlu2 %v3110_v27, %s3754_s5  ;;  %1315 = vrot.lane.b32.xlu1 %v3112_v59, %s3754_s5 }
 0x257   : > { %1321 = vrot.lane.b32.xlu0 %v3114_v29, %s3754_s5 }
 0x25e   : > { %1319 = vrot.lane.b32.xlu2 %v3122_v31, %s3754_s5  ;;  %1386 = vperm.xlu1 %2535, %v1304_v32   ;;  %s2488_s5 = sshll.u32 %s3759_s1, 6 }
 0x25f   : > { %1381 = vperm.xlu0 %2537, %v1303_v33   ;;  %s2332_s3 = scalar_lea.hbm %s3760_s30, %s2488_s5 }
 0x260   : > { %s2335_s7 = sshll.u32 %s2332_s3, 4  ;;  %s2578_s3 = scalar_lea.hbm %s3761_s0, 128  ;;  %s2336_s7 = int_to_ptr.hbm [resolvable:$true] %s2335_s7 }
 0x261   : > { %s2572_s5 = sshra.s32 %s2336_s7, 4  ;;  %s2573_s5 = int_to_ptr.hbm [resolvable:$true] %s2572_s5 }
 0x262   : > { %p2579_p0 = scmp.lt.s32.totalorder %s2573_s5, %s3761_s0 }
 0x266   : > { %1391 = vperm.xlu2 %2536, %v1305_v34   ;;  %1581 = vperm.xlu1 %2535, %v1310_v35  }
 0x267   : > { %1396 = vperm.xlu0 %2537, %v1306_v36  }
 0x26e   : > { %1576 = vperm.xlu2 %2536, %v1309_v37   ;;  %1571 = vperm.xlu1 %2535, %v1308_v38  }
 0x26f   : > { %1609 = vperm.xlu0 %2537, %v1314_v39  }
 0x276   : > { %1604 = vperm.xlu2 %2536, %v1313_v41   ;;  %1599 = vperm.xlu1 %2535, %v1312_v42  }
 0x277   : > { %1566 = vperm.xlu0 %2537, %v1307_v43  }
 0x27e   : > { %1594 = vperm.xlu2 %2536, %v1311_v44  }
 0x290   : > { %v1366_v46 = vpop.permute.xlu2 %1365 }
 0x298   : > { %v1368_v48 = vpop.permute.xlu2 %1367 }
 0x2a0   : > { %v1348_v60 = vpop.permute.xlu2 %1347 }
 0x2a8   : > { %v1364_v49 = vpop.permute.xlu1 %1363  ;;  %v1338_v2 = vpop.permute.xlu2 %1337 }
 0x2a9   : > { %v1370_v50 = vpop.permute.xlu0 %1369  ;;  %v1373_v54 = vsel %vm919_vm0, %v1368_v48, %v1364_v49  ;;  %v1371_v55 = vsel %vm919_vm0, %v1364_v49, %v1368_v48 }
 0x2aa   : > { %v1372_v51 = vsel %vm919_vm0, %v1366_v46, %v1370_v50  ;;  %v1374_v52 = vsel %vm919_vm0, %v1370_v50, %v1366_v46  ;;  %vm1399_vm0 = vcmask 654336  }
 0x2ab   : > { %1418 = vmatpush.msra.mxu2 %v1372_v51  ;;  %2442 = vmatpush.msk.msra.mxu3 %vm927_vm1, %v1374_v52 }
 0x2ad   : > { %1419 = vmatpush.msra.mxu2 %v1371_v55  ;;  %2443 = vmatpush.msk.msra.mxu3 %vm927_vm1, %v1373_v54 }
 0x2b0   : > { %v1354_v61 = vpop.permute.xlu1 %1353  ;;  %v1318_v9 = vpop.permute.xlu2 %1317 }
 0x2b1   : > { %v1350_v63 = vpop.permute.xlu0 %1349 }
 0x2b2   : > { %v1358_v0 = vsel %vm902_vm2, %v1354_v61, %v1350_v63  ;;  %v1356_v1 = vsel %vm902_vm2, %v1350_v63, %v1354_v61 }
 0x2b3   : > { %1420 = vmatpush.msra.mxu2 %v1356_v1  ;;  %2444 = vmatpush.msk.msra.mxu3 %vm910_vm3, %v1358_v0 }
 0x2b8   : > { %v1334_v3 = vpop.permute.xlu1 %1333  ;;  %v1320_v18 = vpop.permute.xlu2 %1319 }
 0x2b9   : > { %v1352_v5 = vpop.permute.xlu0 %1351  ;;  %v1342_v6 = vsel %vm885_vm4, %v1338_v2, %v1334_v3  ;;  %v1340_v8 = vsel %vm885_vm4, %v1334_v3, %v1338_v2 }
 0x2ba   : > { %v1357_v4 = vsel %vm902_vm2, %v1352_v5, %v1348_v60  ;;  %v1355_v45 = vsel %vm902_vm2, %v1348_v60, %v1352_v5 }
 0x2bb   : > { %1421 = vmatpush.msra.mxu2 %v1355_v45  ;;  %2445 = vmatpush.msk.msra.mxu3 %vm910_vm3, %v1357_v4 }
 0x2bd   : > { %1422 = vmatpush.msra.mxu2 %v3110_v27  ;;  %1451 = vmatpush.msra.mxu3 %v3114_v29 }
 0x2bf   : > { %1423 = vmatpush.msra.mxu2 %v3112_v59  ;;  %1452 = vmatpush.msra.mxu3 %v3122_v31 }
 0x2c0   : > { %v1336_v7 = vpop.permute.xlu1 %1335  ;;  %v1392_v17 = vpop.permute.xlu2 %1391 }
 0x2c1   : > { %2434 = vmatpush.msk.msra.mxu2 %vm890_vm5, %v1342_v6  ;;  %1453 = vmatpush.msra.mxu3 %v1340_v8  ;;  %v1332_v16 = vpop.permute.xlu0 %1331 }
 0x2c2   : > { %v1341_v10 = vsel %vm885_vm4, %v1336_v7, %v1332_v16  ;;  %v1339_v11 = vsel %vm885_vm4, %v1332_v16, %v1336_v7 }
 0x2c3   : > { %2435 = vmatpush.msk.msra.mxu2 %vm890_vm5, %v1341_v10  ;;  %1454 = vmatpush.msra.mxu3 %v1339_v11 }
 0x2c8   : > { %v1316_v14 = vpop.permute.xlu1 %1315 }
 0x2c9   : > { %v1322_v12 = vpop.permute.xlu0 %1321  ;;  %v1325_v20 = vsel %vm867_vm6, %v1320_v18, %v1316_v14  ;;  %v1323_v21 = vsel %vm867_vm6, %v1316_v14, %v1320_v18 }
 0x2ca   : > { %v1326_v13 = vsel %vm867_vm6, %v1322_v12, %v1318_v9  ;;  %v1324_v15 = vsel %vm867_vm6, %v1318_v9, %v1322_v12 }
 0x2cb   : > { %2436 = vmatpush.msk.msra.mxu2 %vm873_vm7, %v1326_v13  ;;  %1455 = vmatpush.msra.mxu3 %v1324_v15 }
 0x2cd   : > { %2437 = vmatpush.msk.msra.mxu2 %vm873_vm7, %v1325_v20  ;;  %1456 = vmatpush.msra.mxu3 %v1323_v21 }
 0x2ce   : > { %2438 = vmatmul.msk.f32.vlgmr.msra.gmra.mxu2 %vm1399_vm0, %v1299_v19  ;;  %2446 = vmatmul.msk.f32.vlgmr.msra.gmra.mxu3 %vm1399_vm0, %v1299_v19 }
 0x2d0   : > { %v1387_v27 = vpop.permute.xlu1 %1386 }
 0x2d1   : > { %v1382_v57 = vpop.permute.xlu0 %1381 }
 0x2d6   : > { %2439 = vmatmul.msk.f32.gmra.mxu2 %vm1399_vm0, %v1300_v22  ;;  %2447 = vmatmul.msk.f32.gmra.mxu3 %vm1399_vm0, %v1300_v22 }
 0x2d9   : > { %v1397_v36 = vpop.permute.xlu0 %1396 }
 0x2de   : > { %2440 = vmatmul.msk.f32.gmra.mxu2 %vm1399_vm0, %v1301_v23  ;;  %2448 = vmatmul.msk.f32.gmra.mxu3 %vm1399_vm0, %v1301_v23 }
 0x2e6   : > { %2441 = vmatmul.msk.f32.gmra.mxu2 %vm1399_vm0, %v1302_v62  ;;  %2449 = vmatmul.msk.f32.gmra.mxu3 %vm1399_vm0, %v1302_v62 }
 0x351   : > { %v1429_v24 = vpop.f32.mrf.mxu2  ;;  %v1458_v25 = vpop.f32.mrf.mxu3 }
 0x352   : > { %v1430_v30 = vadd.f32 %v1429_v24, %v1382_v57  ;;  %v1459_v31 = vadd.f32 %v1458_v25, %v1382_v57 }
 0x354   : > { %v1470_v37 = vmax.f32 %v1430_v30, 0.0  ;;  %v1471_v38 = vmax.f32 %v1459_v31, 0.0 }
 0x359   : > { %v1432_v56 = vpop.f32.mrf.mxu2  ;;  %v1461_v26 = vpop.f32.mrf.mxu3 }
 0x35a   : > { %v1433_v29 = vadd.f32 %v1432_v56, %v1387_v27  ;;  %v1462_v58 = vadd.f32 %v1461_v26, %v1387_v27 }
 0x35c   : > { %v1472_v34 = vmax.f32 %v1433_v29, 0.0  ;;  %v1473_v35 = vmax.f32 %v1462_v58, 0.0 }
 0x35e   : > { %v1478_v44 = vadd.f32 %v1472_v34, %v1470_v37  ;;  %v1487_v46 = vadd.f32 %v1473_v35, %v1471_v38 }
 0x361   : > { %v1435_v28 = vpop.f32.mrf.mxu2  ;;  %v1464_v59 = vpop.f32.mrf.mxu3 }
 0x362   : > { %v1436_v32 = vadd.f32 %v1435_v28, %v1392_v17  ;;  %v1465_v33 = vadd.f32 %v1464_v59, %v1392_v17 }
 0x364   : > { %v1474_v39 = vmax.f32 %v1436_v32, 0.0  ;;  %v1475_v41 = vmax.f32 %v1465_v33, 0.0 }
 0x366   : > { %v1479_v50 = vadd.f32 %v1478_v44, %v1474_v39  ;;  %v1488_v51 = vadd.f32 %v1487_v46, %v1475_v41 }
 0x369   : > { %v1438_v42 = vpop.f32.mrf.mxu2  ;;  %v1467_v43 = vpop.f32.mrf.mxu3 }
 0x36a   : > { %v1439_v48 = vadd.f32 %v1438_v42, %v1397_v36  ;;  %v1468_v49 = vadd.f32 %v1467_v43, %v1397_v36 }
 0x36c   : > { %v1476_v52 = vmax.f32 %v1439_v48, 0.0  ;;  %v1477_v54 = vmax.f32 %v1468_v49, 0.0 }
 0x36e   : > { %v1480_v55 = vadd.f32 %v1479_v50, %v1476_v52  ;;  %v1489_v60 = vadd.f32 %v1488_v51, %v1477_v54  ;;  %v1582_v51 = vpop.permute.xlu1 %1581 }
 0x370   : > { %v1481_v61 = vrot.slane %v1480_v55, 4  ;;  %v1490_v63 = vrot.slane %v1489_v60, 4 }
 0x372   : > { %v1482_v0 = vadd.f32 %v1481_v61, %v1480_v55  ;;  %v1491_v1 = vadd.f32 %v1490_v63, %v1489_v60  ;;  %v1577_v55 = vpop.permute.xlu2 %1576 }
 0x374   : > { %v1483_v2 = vrot.slane %v1482_v0, 2  ;;  %v1492_v3 = vrot.slane %v1491_v1, 2 }
 0x376   : > { %v1484_v5 = vadd.f32 %v1483_v2, %v1482_v0  ;;  %v1493_v4 = vadd.f32 %v1492_v3, %v1491_v1 }
 0x378   : > { %v1485_v45 = vrot.slane %v1484_v5, 1  ;;  %v1494_v6 = vrot.slane %v1493_v4, 1 }
 0x37a   : > { %v1486_v7 = vadd.f32 %v1485_v45, %v1484_v5  ;;  %v1495_v8 = vadd.f32 %v1494_v6, %v1493_v4  ;;  %v1572_v6 = vpop.permute.xlu1 %1571 }
 0x37c   : > { %v1496_v9 = vmul.f32 0.03125, %v1486_v7  ;;  %v1497_v16 = vmul.f32 0.03125, %v1495_v8 }
 0x37e   : > { %v3250_v10 = vsub.f32 %v1470_v37, %v1496_v9  ;;  %v3252_v11 = vsub.f32 %v1472_v34, %v1496_v9  ;;  %v1502_v14 = vsub.f32 %v1474_v39, %v1496_v9  ;;  %v3254_v12 = vsub.f32 %v1471_v38, %v1497_v16 }
 0x37f   : > { %v3256_v13 = vsub.f32 %v1473_v35, %v1497_v16  ;;  %v3258_v15 = vsub.f32 %v1475_v41, %v1497_v16  ;;  %v1504_v18 = vsub.f32 %v1476_v52, %v1496_v9  ;;  %v1505_v21 = vsub.f32 %v1477_v54, %v1497_v16  ;;  %v1605_v16 = vpop.permute.xlu2 %1604 }
 0x380   : > { %v1506_v19 = vmul.f32 %v3250_v10, %v3250_v10  ;;  %v1508_v20 = vmul.f32 %v3252_v11, %v3252_v11  ;;  %v1507_v22 = vmul.f32 %v3254_v12, %v3254_v12  ;;  %v1510_v62 = vmul.f32 %v1502_v14, %v1502_v14 }
 0x381   : > { %v1509_v23 = vmul.f32 %v3256_v13, %v3256_v13  ;;  %v1511_v25 = vmul.f32 %v3258_v15, %v3258_v15  ;;  %v1512_v26 = vmul.f32 %v1504_v18, %v1504_v18  ;;  %v1513_v27 = vmul.f32 %v1505_v21, %v1505_v21 }
 0x382   : > { %v1514_v24 = vadd.f32 %v1508_v20, %v1506_v19  ;;  %v1610_v19 = vpop.permute.xlu0 %1609 }
 0x383   : > { %v1523_v56 = vadd.f32 %v1509_v23, %v1507_v22 }
 0x384   : > { %v1515_v57 = vadd.f32 %v1514_v24, %v1510_v62 }
 0x385   : > { %v1524_v28 = vadd.f32 %v1523_v56, %v1511_v25 }
 0x386   : > { %v1516_v59 = vadd.f32 %v1515_v57, %v1512_v26  ;;  %v1600_v26 = vpop.permute.xlu1 %1599 }
 0x387   : > { %v1525_v29 = vadd.f32 %v1524_v28, %v1513_v27 }
 0x388   : > { %v1517_v58 = vrot.slane %v1516_v59, 4 }
 0x389   : > { %v1526_v17 = vrot.slane %v1525_v29, 4 }
 0x38a   : > { %v1518_v30 = vadd.f32 %v1517_v58, %v1516_v59  ;;  %v1567_v28 = vpop.permute.xlu0 %1566  ;;  %v1595_v58 = vpop.permute.xlu2 %1594 }
 0x38b   : > { %v1527_v31 = vadd.f32 %v1526_v17, %v1525_v29 }
 0x38c   : > { %v1519_v32 = vrot.slane %v1518_v30, 2 }
 0x38d   : > { %v1528_v33 = vrot.slane %v1527_v31, 2 }
 0x38e   : > { %v1520_v34 = vadd.f32 %v1519_v32, %v1518_v30  ;;  %v1688_v30 = vld [vmem:[%s3672_s16] sm:$0xff]  ;;  %v1690_v32 = vld [vmem:[%s3672_s16 + $0x10] sm:$0xff] }
 0x38f   : > { %v1529_v35 = vadd.f32 %v1528_v33, %v1527_v31  ;;  %v1802_v31 = vld [vmem:[%s3673_s17 + $0x18] sm:$0xff] }
 0x390   : > { %v1521_v36 = vrot.slane %v1520_v34, 1  ;;  %v1691_v33 = vld [vmem:[%s3672_s16 + $0x18] sm:$0xff] }
 0x391   : > { %v1530_v37 = vrot.slane %v1529_v35, 1 }
 0x392   : > { %v1522_v38 = vadd.f32 %v1521_v36, %v1520_v34  ;;  %v1800_v34 = vld [vmem:[%s3673_s17 + $0x8] sm:$0xff]  ;;  %v1806_v36 = vld [vmem:[%s3674_s18 + $0x18] sm:$0xff] }
 0x393   : > { %v1531_v39 = vadd.f32 %v1530_v37, %v1529_v35  ;;  %v1801_v35 = vld [vmem:[%s3673_s17 + $0x10] sm:$0xff]  ;;  %v1804_v37 = vld [vmem:[%s3674_s18 + $0x8] sm:$0xff] }
 0x394   : > { %v1532_v41 = vmul.f32 0.03125, %v1522_v38  ;;  %v1805_v38 = vld [vmem:[%s3674_s18 + $0x10] sm:$0xff] }
 0x395   : > { %v1533_v42 = vmul.f32 0.03125, %v1531_v39  ;;  %v1799_v39 = vld [vmem:[%s3673_s17] sm:$0xff] }
 0x396   : > { %v1534_v43 = vadd.f32 1e-05, %v1532_v41  ;;  %v1955_v41 = vld [vmem:[%s3676_s20 + $0x10] sm:$0xff] }
 0x397   : > { %v1535_v44 = vadd.f32 1e-05, %v1533_v42  ;;  %v1803_v42 = vld [vmem:[%s3674_s18] sm:$0xff] }
 0x398   : > { %2546 = vrsqrt.f32 %v1534_v43  ;;  %vm1542_vm7 = vweird.f32 %v1534_v43 }
 0x399   : > { %2548 = vrsqrt.f32 %v1535_v44  ;;  %vm1552_vm14 = vweird.f32 %v1535_v44 }
 0x39e   : > { %v2547_v46 = vpop.eup %2546 }
 0x39f   : > { %v2549_v48 = vpop.eup %2548  ;;  %v1537_v49 = vmul.f32 %v2547_v46, %v1534_v43  ;;  %vm1543_vm1 = vweird.f32 %v2547_v46  ;;  %v1956_v43 = vld [vmem:[%s3676_s20 + $0x18] sm:$0xff] }
 0x3a0   : > { %v1547_v50 = vmul.f32 %v2549_v48, %v1535_v44  ;;  %vm1553_vm6 = vweird.f32 %v2549_v48  ;;  %vm1544_vm13 = vmor %vm1542_vm7, %vm1543_vm1  ;;  %v2060_v44 = vld [vmem:[%s3678_s22] sm:$0xff] }
 0x3a1   : > { %v1538_v52 = vmul.f32 %v2547_v46, %v1537_v49  ;;  %vm1554_vm15 = vmor %vm1552_vm14, %vm1553_vm6  ;;  %v2063_v49 = vld [vmem:[%s3678_s22 + $0x18] sm:$0xff] }
 0x3a2   : > { %v1548_v54 = vmul.f32 %v2549_v48, %v1547_v50  ;;  %v2061_v50 = vld [vmem:[%s3678_s22 + $0x8] sm:$0xff] }
 0x3a3   : > { %v1539_v60 = vmul.f32 0.5, %v1538_v52  ;;  %v2164_v52 = vld [vmem:[%s3679_s23 + $0x10] sm:$0xff] }
 0x3a4   : > { %v1549_v61 = vmul.f32 0.5, %v1548_v54  ;;  %v2162_v54 = vld [vmem:[%s3679_s23] sm:$0xff] }
 0x3a5   : > { %v1540_v63 = vsub.f32 1.5, %v1539_v60  ;;  %v2167_v60 = vld [vmem:[%s3680_s24 + $0x8] sm:$0xff] }
 0x3a6   : > { %v1550_v0 = vsub.f32 1.5, %v1549_v61  ;;  %v2165_v61 = vld [vmem:[%s3679_s23 + $0x18] sm:$0xff] }
 0x3a7   : > { %v1541_v1 = vmul.f32 %v2547_v46, %v1540_v63  ;;  %v2166_v63 = vld [vmem:[%s3680_s24] sm:$0xff] }
 0x3a8   : > { %v1551_v2 = vmul.f32 %v2549_v48, %v1550_v0  ;;  %v2168_v0 = vld [vmem:[%s3680_s24 + $0x10] sm:$0xff] }
 0x3a9   : > { %v1545_v3 = vsel %vm1544_vm13, %v2547_v46, %v1541_v1  ;;  %v1954_v46 = vld [vmem:[%s3676_s20 + $0x8] sm:$0xff]  ;;  %v2169_v1 = vld [vmem:[%s3680_s24 + $0x18] sm:$0xff] }
 0x3aa   : > { %v1562_v5 = vmul.f32 %v1545_v3, %v1504_v18  ;;  %v1555_v4 = vsel %vm1554_vm15, %v2549_v48, %v1551_v2  ;;  %v1560_v45 = vmul.f32 %v1545_v3, %v1502_v14  ;;  %v1558_v18 = vmul.f32 %v1545_v3, %v3252_v11  ;;  %v1953_v48 = vld [vmem:[%s3676_s20] sm:$0xff] }
 0x3ab   : > { %v1563_v7 = vmul.f32 %v1555_v4, %v1505_v21  ;;  %v1559_v62 = vmul.f32 %v1555_v4, %v3256_v13  ;;  %v1561_v24 = vmul.f32 %v1555_v4, %v3258_v15  ;;  %v1556_v57 = vmul.f32 %v1545_v3, %v3250_v10 }
 0x3ac   : > { %v1590_v8 = vmul.f32 %v1582_v51, %v1562_v5  ;;  %v1588_v9 = vmul.f32 %v1577_v55, %v1560_v45  ;;  %v1586_v56 = vmul.f32 %v1572_v6, %v1558_v18  ;;  %v1557_v27 = vmul.f32 %v1555_v4, %v3254_v12  ;;  %v1689_v12 = vld [vmem:[%s3672_s16 + $0x8] sm:$0xff] }
 0x3ad   : > { %v1591_v20 = vmul.f32 %v1582_v51, %v1563_v7  ;;  %v1587_v14 = vmul.f32 %v1572_v6, %v1559_v62  ;;  %v1589_v21 = vmul.f32 %v1577_v55, %v1561_v24  ;;  %v1584_v59 = vmul.f32 %v1567_v28, %v1556_v57  ;;  %v2062_v51 = vld [vmem:[%s3678_s22 + $0x10] sm:$0xff]  ;;  %v2163_v55 = vld [vmem:[%s3679_s23 + $0x8] sm:$0xff] }
 0x3ae   : > { %v3270_v22 = vadd.f32 %v1605_v16, %v1588_v9  ;;  %v3272_v23 = vadd.f32 %v1610_v19, %v1590_v8  ;;  %v3290_v11 = vadd.f32 %v1600_v26, %v1586_v56  ;;  %v1585_v29 = vmul.f32 %v1567_v28, %v1557_v27 }
 0x3af   : > { %v3276_v25 = vadd.f32 %v1610_v19, %v1591_v20  ;;  %v3285_v13 = vadd.f32 %v1600_v26, %v1587_v14  ;;  %v3287_v15 = vadd.f32 %v1605_v16, %v1589_v21  ;;  %v3299_v17 = vadd.f32 %v1595_v58, %v1584_v59 }
 0x3b0   : > { %1660 = vrot.lane.b32.xlu2 %v3270_v22, %s3752_s29  ;;  %1662 = vrot.lane.b32.xlu0 %v3272_v23, %s3752_s29  ;;  %v3301_v10 = vadd.f32 %v1595_v58, %v1585_v29 }
 0x3b1   : > { %1670 = vrot.lane.b32.xlu1 %v3276_v25, %s3752_s29 }
 0x3b8   : > { %1666 = vrot.lane.b32.xlu2 %v3285_v13, %s3752_s29  ;;  %1668 = vrot.lane.b32.xlu0 %v3287_v15, %s3752_s29 }
 0x3b9   : > { %1658 = vrot.lane.b32.xlu1 %v3290_v11, %s3752_s29 }
 0x3c0   : > { %1630 = vrot.lane.b32.xlu2 %v3272_v23, %s3753_s9  ;;  %1656 = vrot.lane.b32.xlu0 %v3299_v17, %s3752_s29 }
 0x3c1   : > { %1664 = vrot.lane.b32.xlu1 %v3301_v10, %s3752_s29 }
 0x3c8   : > { %1636 = vrot.lane.b32.xlu2 %v3287_v15, %s3753_s9  ;;  %1638 = vrot.lane.b32.xlu0 %v3276_v25, %s3753_s9 }
 0x3c9   : > { %1628 = vrot.lane.b32.xlu1 %v3270_v22, %s3753_s9 }
 0x3d0   : > { %1624 = vrot.lane.b32.xlu2 %v3299_v17, %s3753_s9  ;;  %1626 = vrot.lane.b32.xlu0 %v3290_v11, %s3753_s9 }
 0x3d1   : > { %1634 = vrot.lane.b32.xlu1 %v3285_v13, %s3753_s9 }
 0x3d8   : > { %1699 = vperm.xlu2 %2536, %v1689_v12   ;;  %1632 = vrot.lane.b32.xlu0 %v3301_v10, %s3753_s9  ;;  %s2574_s9 = scalar_lea.hbm %s2573_s5, 64 }
 0x3d9   : > { %1694 = vperm.xlu1 %2535, %v1688_v30   ;;  %p2575_p11 = scmp.ne.s32.totalorder %s2573_s5, %s2574_s9  ;;  %p2580_p1 = scmp.lt.s32.totalorder %s2578_s3, %s2574_s9 }
 0x3db   : > { %p2576_p12 = pnand %p2575_p11, %p2797_p5  ;;  %p2581_p2 = por %p2580_p1, %p2579_p0 }
 0x3dd   : > { %p2577_p13 = pneg %p2576_p12 }
 0x3df   : > { %p2582_p3 = pnand %p2581_p2, %p2577_p13 }
 0x3e0   : > { %1910 = vperm.xlu2 %2536, %v1802_v31   ;;  %1704 = vperm.xlu0 %2537, %v1690_v32  }
 0x3e1   : > { %1709 = vperm.xlu1 %2535, %v1691_v33   ;;  %v1620_v33 = vld [vmem:[%s3671_s15] sm:$0xff] }
 0x3e8   : > { %1900 = vperm.xlu2 %2536, %v1800_v34   ;;  %1905 = vperm.xlu0 %2537, %v1801_v35  }
 0x3e9   : > { %1938 = vperm.xlu1 %2535, %v1806_v36   ;;  %v1621_v36 = vld [vmem:[%s3671_s15 + $0x8] sm:$0xff] }
 0x3f0   : > { %1928 = vperm.xlu2 %2536, %v1804_v37   ;;  %1933 = vperm.xlu0 %2537, %v1805_v38   ;;  %v1622_v37 = vld [vmem:[%s3671_s15 + $0x10] sm:$0xff] }
 0x3f1   : > { %1895 = vperm.xlu1 %2535, %v1799_v39  }
 0x3f8   : > { %1969 = vperm.xlu2 %2536, %v1955_v41   ;;  %1923 = vperm.xlu0 %2537, %v1803_v42  }
 0x3f9   : > { %1974 = vperm.xlu1 %2535, %v1956_v43  }
 0x400   : > { %2066 = vperm.xlu2 %2536, %v2060_v44   ;;  %1964 = vperm.xlu0 %2537, %v1954_v46  }
 0x401   : > { %1959 = vperm.xlu1 %2535, %v1953_v48  }
 0x408   : > { %2081 = vperm.xlu2 %2536, %v2063_v49   ;;  %2071 = vperm.xlu0 %2537, %v2061_v50  }
 0x409   : > { %2076 = vperm.xlu1 %2535, %v2062_v51  }
 0x40a   : > { %v1661_v2 = vpop.permute.xlu2 %1660 }
 0x410   : > { %2268 = vperm.xlu2 %2536, %v2164_v52   ;;  %2258 = vperm.xlu0 %2537, %v2162_v54  }
 0x411   : > { %2263 = vperm.xlu1 %2535, %v2163_v55  }
 0x412   : > { %v1667_v7 = vpop.permute.xlu2 %1666 }
 0x418   : > { %2291 = vperm.xlu2 %2536, %v2167_v60   ;;  %2273 = vperm.xlu0 %2537, %v2165_v61  }
 0x419   : > { %2286 = vperm.xlu1 %2535, %v2166_v63  }
 0x41a   : > { %v1631_v21 = vpop.permute.xlu2 %1630 }
 0x420   : > { %2296 = vperm.xlu0 %2537, %v2168_v0  }
 0x421   : > { %2301 = vperm.xlu1 %2535, %v2169_v1  }
 0x422   : > { %v1663_v3 = vpop.permute.xlu0 %1662  ;;  %v1637_v27 = vpop.permute.xlu2 %1636 }
 0x423   : > { %v1671_v5 = vpop.permute.xlu1 %1670 }
 0x424   : > { %v1675_v4 = vsel %vm902_vm2, %v1663_v3, %v1671_v5  ;;  %v1679_v45 = vsel %vm902_vm2, %v1671_v5, %v1663_v3 }
 0x425   : > { %1729 = vmatpush.msrb.mxu0 %v1675_v4  ;;  %2458 = vmatpush.msk.msrb.mxu1 %vm910_vm3, %v1679_v45 }
 0x42a   : > { %v1669_v6 = vpop.permute.xlu0 %1668  ;;  %v1625_v31 = vpop.permute.xlu2 %1624 }
 0x42b   : > { %v1659_v8 = vpop.permute.xlu1 %1658  ;;  %v1674_v9 = vsel %vm902_vm2, %v1661_v2, %v1669_v6  ;;  %v1678_v16 = vsel %vm902_vm2, %v1669_v6, %v1661_v2 }
 0x42c   : > { %1730 = vmatpush.msrb.mxu0 %v1674_v9  ;;  %2459 = vmatpush.msk.msrb.mxu1 %vm910_vm3, %v1678_v16  ;;  %v1673_v19 = vsel %vm902_vm2, %v1659_v8, %v1667_v7  ;;  %v1677_v20 = vsel %vm902_vm2, %v1667_v7, %v1659_v8 }
 0x42e   : > { %1731 = vmatpush.msrb.mxu0 %v1673_v19  ;;  %2460 = vmatpush.msk.msrb.mxu1 %vm910_vm3, %v1677_v20 }
 0x432   : > { %v1657_v62 = vpop.permute.xlu0 %1656  ;;  %v1700_v43 = vpop.permute.xlu2 %1699 }
 0x433   : > { %v1665_v24 = vpop.permute.xlu1 %1664 }
 0x434   : > { %v1672_v18 = vsel %vm902_vm2, %v1657_v62, %v1665_v24  ;;  %v1676_v14 = vsel %vm902_vm2, %v1665_v24, %v1657_v62  ;;  %vm1712_vm2 = vcmask 785408  }
 0x435   : > { %1732 = vmatpush.msrb.mxu0 %v1672_v18  ;;  %2461 = vmatpush.msk.msrb.mxu1 %vm910_vm3, %v1676_v14 }
 0x437   : > { %1733 = vmatpush.msrb.mxu0 %v3272_v23  ;;  %1762 = vmatpush.msrb.mxu1 %v3276_v25 }
 0x439   : > { %1734 = vmatpush.msrb.mxu0 %v3270_v22  ;;  %1763 = vmatpush.msrb.mxu1 %v3287_v15 }
 0x43a   : > { %v1639_v56 = vpop.permute.xlu0 %1638 }
 0x43b   : > { %v1629_v26 = vpop.permute.xlu1 %1628  ;;  %1735 = vmatpush.msrb.mxu0 %v3290_v11  ;;  %1764 = vmatpush.msrb.mxu1 %v3285_v13  ;;  %v1647_v47 = vsel %vm885_vm4, %v1639_v56, %v1631_v21  ;;  %v1643_v57 = vsel %vm885_vm4, %v1631_v21, %v1639_v56 }
 0x43c   : > { %v1646_v28 = vsel %vm885_vm4, %v1637_v27, %v1629_v26  ;;  %v1642_v59 = vsel %vm885_vm4, %v1629_v26, %v1637_v27 }
 0x43d   : > { %1736 = vmatpush.msrb.mxu0 %v3299_v17  ;;  %1765 = vmatpush.msrb.mxu1 %v3301_v10 }
 0x43f   : > { %2450 = vmatpush.msk.msrb.mxu0 %vm890_vm5, %v1647_v47  ;;  %1766 = vmatpush.msrb.mxu1 %v1643_v57 }
 0x441   : > { %2451 = vmatpush.msk.msrb.mxu0 %vm890_vm5, %v1646_v28  ;;  %1767 = vmatpush.msrb.mxu1 %v1642_v59 }
 0x442   : > { %v1627_v29 = vpop.permute.xlu0 %1626 }
 0x443   : > { %v1635_v58 = vpop.permute.xlu1 %1634 }
 0x444   : > { %v1645_v12 = vsel %vm885_vm4, %v1635_v58, %v1627_v29  ;;  %v1641_v30 = vsel %vm885_vm4, %v1627_v29, %v1635_v58 }
 0x445   : > { %2452 = vmatpush.msk.msrb.mxu0 %vm890_vm5, %v1645_v12  ;;  %1768 = vmatpush.msrb.mxu1 %v1641_v30 }
 0x44a   : > { %v1633_v32 = vpop.permute.xlu0 %1632 }
 0x44b   : > { %v1644_v34 = vsel %vm885_vm4, %v1633_v32, %v1625_v31  ;;  %v1640_v35 = vsel %vm885_vm4, %v1625_v31, %v1633_v32  ;;  %v1695_v42 = vpop.permute.xlu1 %1694 }
 0x44c   : > { %2453 = vmatpush.msk.msrb.mxu0 %vm890_vm5, %v1644_v34  ;;  %1769 = vmatpush.msrb.mxu1 %v1640_v35 }
 0x44d   : > { %2454 = vmatmul.msk.f32.vlgmr.msrb.gmra.mxu0 %vm1712_vm2, %v1620_v33  ;;  %2462 = vmatmul.msk.f32.vlgmr.msrb.gmra.mxu1 %vm1712_vm2, %v1620_v33 }
 0x452   : > { %v1705_v44 = vpop.permute.xlu0 %1704 }
 0x453   : > { %v1710_v3 = vpop.permute.xlu1 %1709 }
 0x455   : > { %2455 = vmatmul.msk.f32.gmra.mxu0 %vm1712_vm2, %v1621_v36  ;;  %2463 = vmatmul.msk.f32.gmra.mxu1 %vm1712_vm2, %v1621_v36 }
 0x45d   : > { %2456 = vmatmul.msk.f32.gmra.mxu0 %vm1712_vm2, %v1622_v37  ;;  %2464 = vmatmul.msk.f32.gmra.mxu1 %vm1712_vm2, %v1622_v37 }
 0x465   : > { %2457 = vmatmul.msk.f32.gmra.mxu0 %vm1712_vm2, %v1623_v40  ;;  %2465 = vmatmul.msk.f32.gmra.mxu1 %vm1712_vm2, %v1623_v40 }
 0x4ca   : > { %v1742_v53 = vpop.f32.mrf.mxu0  ;;  %v1771_v38 = vpop.f32.mrf.mxu1 }
 0x4cb   : > { %v1743_v49 = vadd.f32 %v1742_v53, %v1695_v42  ;;  %v1772_v50 = vadd.f32 %v1771_v38, %v1695_v42 }
 0x4cd   : > { %v1783_v63 = vmax.f32 %v1743_v49, 0.0  ;;  %v1784_v0 = vmax.f32 %v1772_v50, 0.0 }
 0x4cf   : > { %v1791_v45 = vadd.f32 %v1783_v63, %v3299_v17  ;;  %v1792_v6 = vadd.f32 %v1784_v0, %v3301_v10 }
 0x4d2   : > { %v1745_v39 = vpop.f32.mrf.mxu0  ;;  %v1774_v41 = vpop.f32.mrf.mxu1 }
 0x4d3   : > { %v1746_v46 = vadd.f32 %v1745_v39, %v1700_v43  ;;  %v1775_v48 = vadd.f32 %v1774_v41, %v1700_v43 }
 0x4d5   : > { %v1785_v60 = vmax.f32 %v1746_v46, 0.0  ;;  %v1786_v61 = vmax.f32 %v1775_v48, 0.0 }
 0x4d7   : > { %v1793_v5 = vadd.f32 %v1785_v60, %v3290_v11  ;;  %v1794_v4 = vadd.f32 %v1786_v61, %v3285_v13 }
 0x4d9   : > { %v1807_v62 = vadd.f32 %v1793_v5, %v1791_v45  ;;  %v1816_v24 = vadd.f32 %v1794_v4, %v1792_v6 }
 0x4da   : > { %v1748_v51 = vpop.f32.mrf.mxu0  ;;  %v1777_v52 = vpop.f32.mrf.mxu1 }
 0x4db   : > { %v1749_v54 = vadd.f32 %v1748_v51, %v1705_v44  ;;  %v1778_v55 = vadd.f32 %v1777_v52, %v1705_v44 }
 0x4dd   : > { %v1787_v1 = vmax.f32 %v1749_v54, 0.0  ;;  %v1788_v2 = vmax.f32 %v1778_v55, 0.0 }
 0x4df   : > { %v1795_v9 = vadd.f32 %v1787_v1, %v3270_v22  ;;  %v1796_v16 = vadd.f32 %v1788_v2, %v3287_v15 }
 0x4e1   : > { %v1808_v21 = vadd.f32 %v1807_v62, %v1795_v9  ;;  %v1817_v11 = vadd.f32 %v1816_v24, %v1796_v16  ;;  %v1906_v24 = vpop.permute.xlu0 %1905 }
 0x4e2   : > { %v1751_v7 = vpop.f32.mrf.mxu0  ;;  %v1780_v8 = vpop.f32.mrf.mxu1 }
 0x4e3   : > { %v1752_v19 = vadd.f32 %v1751_v7, %v1710_v3  ;;  %v1781_v20 = vadd.f32 %v1780_v8, %v1710_v3 }
 0x4e5   : > { %v1789_v18 = vmax.f32 %v1752_v19, 0.0  ;;  %v1790_v14 = vmax.f32 %v1781_v20, 0.0  ;;  %v1911_v19 = vpop.permute.xlu2 %1910 }
 0x4e7   : > { %v1797_v13 = vadd.f32 %v1789_v18, %v3272_v23  ;;  %v1798_v17 = vadd.f32 %v1790_v14, %v3276_v25 }
 0x4e9   : > { %v1809_v56 = vadd.f32 %v1808_v21, %v1797_v13  ;;  %v1818_v10 = vadd.f32 %v1817_v11, %v1798_v17 }
 0x4eb   : > { %v1810_v26 = vrot.slane %v1809_v56, 4  ;;  %v1819_v47 = vrot.slane %v1818_v10, 4 }
 0x4ed   : > { %v1811_v57 = vadd.f32 %v1810_v26, %v1809_v56  ;;  %v1820_v22 = vadd.f32 %v1819_v47, %v1818_v10  ;;  %v1939_v56 = vpop.permute.xlu1 %1938  ;;  %v1901_v47 = vpop.permute.xlu2 %1900 }
 0x4ef   : > { %v1812_v27 = vrot.slane %v1811_v57, 2  ;;  %v1821_v15 = vrot.slane %v1820_v22, 2 }
 0x4f1   : > { %v1813_v28 = vadd.f32 %v1812_v27, %v1811_v57  ;;  %v1822_v59 = vadd.f32 %v1821_v15, %v1820_v22  ;;  %v1934_v27 = vpop.permute.xlu0 %1933 }
 0x4f3   : > { %v1814_v29 = vrot.slane %v1813_v28, 1  ;;  %v1823_v58 = vrot.slane %v1822_v59, 1 }
 0x4f5   : > { %v1815_v12 = vadd.f32 %v1814_v29, %v1813_v28  ;;  %v1824_v30 = vadd.f32 %v1823_v58, %v1822_v59 }
 0x4f7   : > { %v1825_v31 = vmul.f32 0.03125, %v1815_v12  ;;  %v1826_v32 = vmul.f32 0.03125, %v1824_v30 }
 0x4f9   : > { %v3483_v33 = vsub.f32 %v1791_v45, %v1825_v31  ;;  %v3485_v23 = vsub.f32 %v1793_v5, %v1825_v31  ;;  %v3487_v25 = vsub.f32 %v1795_v9, %v1825_v31  ;;  %v3489_v34 = vsub.f32 %v1792_v6, %v1826_v32 }
 0x4fa   : > { %v3491_v35 = vsub.f32 %v1794_v4, %v1826_v32  ;;  %v3493_v36 = vsub.f32 %v1796_v16, %v1826_v32  ;;  %v1833_v37 = vsub.f32 %v1797_v13, %v1825_v31  ;;  %v1834_v38 = vsub.f32 %v1798_v17, %v1826_v32 }
 0x4fb   : > { %v1835_v40 = vmul.f32 %v3483_v33, %v3483_v33  ;;  %v1837_v53 = vmul.f32 %v3485_v23, %v3485_v23  ;;  %v1836_v39 = vmul.f32 %v3489_v34, %v3489_v34  ;;  %v1839_v42 = vmul.f32 %v3487_v25, %v3487_v25 }
 0x4fc   : > { %v1838_v41 = vmul.f32 %v3491_v35, %v3491_v35  ;;  %v1840_v44 = vmul.f32 %v3493_v36, %v3493_v36  ;;  %v1841_v48 = vmul.f32 %v1833_v37, %v1833_v37  ;;  %v1842_v50 = vmul.f32 %v1834_v38, %v1834_v38 }
 0x4fd   : > { %v1843_v43 = vadd.f32 %v1837_v53, %v1835_v40 }
 0x4fe   : > { %v1852_v46 = vadd.f32 %v1838_v41, %v1836_v39 }
 0x4ff   : > { %v1844_v49 = vadd.f32 %v1843_v43, %v1839_v42 }
 0x500   : > { %v1853_v51 = vadd.f32 %v1852_v46, %v1840_v44  ;;  %v1896_v44 = vpop.permute.xlu1 %1895 }
 0x501   : > { %v1845_v52 = vadd.f32 %v1844_v49, %v1841_v48  ;;  %v1924_v48 = vpop.permute.xlu0 %1923 }
 0x502   : > { %v1854_v54 = vadd.f32 %v1853_v51, %v1842_v50  ;;  %v1949_v51 = vld [vmem:[%s3675_s19] sm:$0xff] }
 0x503   : > { %v1846_v55 = vrot.slane %v1845_v52, 4 }
 0x504   : > { %v1855_v60 = vrot.slane %v1854_v54, 4 }
 0x505   : > { %v1847_v61 = vadd.f32 %v1846_v55, %v1845_v52  ;;  %v1951_v55 = vld [vmem:[%s3675_s19 + $0x10] sm:$0xff] }
 0x506   : > { %v1856_v63 = vadd.f32 %v1855_v60, %v1854_v54  ;;  %v1950_v54 = vld [vmem:[%s3675_s19 + $0x8] sm:$0xff]  ;;  %v1952_v60 = vld [vmem:[%s3675_s19 + $0x18] sm:$0xff] }
 0x507   : > { %v1848_v0 = vrot.slane %v1847_v61, 2 }
 0x508   : > { %v1857_v1 = vrot.slane %v1856_v63, 2 }
 0x509   : > { %v1849_v2 = vadd.f32 %v1848_v0, %v1847_v61 }
 0x50a   : > { %v1858_v3 = vadd.f32 %v1857_v1, %v1856_v63 }
 0x50b   : > { %v1850_v5 = vrot.slane %v1849_v2, 1 }
 0x50c   : > { %v1859_v4 = vrot.slane %v1858_v3, 1 }
 0x50d   : > { %v1851_v45 = vadd.f32 %v1850_v5, %v1849_v2  ;;  %v1975_v5 = vpop.permute.xlu1 %1974 }
 0x50e   : > { %v1860_v6 = vadd.f32 %v1859_v4, %v1858_v3 }
 0x50f   : > { %v1861_v7 = vmul.f32 0.03125, %v1851_v45 }
 0x510   : > { %v1862_v8 = vmul.f32 0.03125, %v1860_v6 }
 0x511   : > { %v1863_v9 = vadd.f32 1e-05, %v1861_v7 }
 0x512   : > { %v1864_v16 = vadd.f32 1e-05, %v1862_v8 }
 0x513   : > { %2550 = vrsqrt.f32 %v1863_v9  ;;  %vm1871_vm5 = vweird.f32 %v1863_v9 }
 0x514   : > { %2552 = vrsqrt.f32 %v1864_v16  ;;  %vm1881_vm9 = vweird.f32 %v1864_v16 }
 0x519   : > { %v2551_v20 = vpop.eup %2550 }
 0x51a   : > { %v2553_v62 = vpop.eup %2552  ;;  %v1866_v18 = vmul.f32 %v2551_v20, %v1863_v9  ;;  %vm1872_vm3 = vweird.f32 %v2551_v20  ;;  %v1965_v9 = vpop.permute.xlu0 %1964 }
 0x51b   : > { %v1876_v14 = vmul.f32 %v2553_v62, %v1864_v16  ;;  %vm1882_vm4 = vweird.f32 %v2553_v62  ;;  %vm1873_vm8 = vmor %vm1871_vm5, %vm1872_vm3 }
 0x51c   : > { %v1867_v21 = vmul.f32 %v2551_v20, %v1866_v18  ;;  %vm1883_vm10 = vmor %vm1881_vm9, %vm1882_vm4 }
 0x51d   : > { %v1877_v11 = vmul.f32 %v2553_v62, %v1876_v14 }
 0x51e   : > { %v1868_v13 = vmul.f32 0.5, %v1867_v21 }
 0x51f   : > { %v1878_v17 = vmul.f32 0.5, %v1877_v11 }
 0x520   : > { %v1869_v10 = vsub.f32 1.5, %v1868_v13 }
 0x521   : > { %v1879_v26 = vsub.f32 1.5, %v1878_v17 }
 0x522   : > { %v1870_v57 = vmul.f32 %v2551_v20, %v1869_v10 }
 0x523   : > { %v1880_v22 = vmul.f32 %v2553_v62, %v1879_v26 }
 0x524   : > { %v1874_v15 = vsel %vm1873_vm8, %v2551_v20, %v1870_v57 }
 0x525   : > { %v1891_v28 = vmul.f32 %v1874_v15, %v1833_v37  ;;  %v1884_v59 = vsel %vm1883_vm10, %v2553_v62, %v1880_v22  ;;  %v1889_v29 = vmul.f32 %v1874_v15, %v3487_v25  ;;  %v1887_v58 = vmul.f32 %v1874_v15, %v3485_v23  ;;  %v2057_v22 = vld [vmem:[%s3677_s21 + $0x8] sm:$0xff] }
 0x526   : > { %v1892_v12 = vmul.f32 %v1884_v59, %v1834_v38  ;;  %v1890_v30 = vmul.f32 %v1884_v59, %v3493_v36  ;;  %v1888_v31 = vmul.f32 %v1884_v59, %v3491_v35  ;;  %v1885_v53 = vmul.f32 %v1874_v15, %v3483_v33  ;;  %v1929_v38 = vpop.permute.xlu2 %1928  ;;  %v2059_v15 = vld [vmem:[%s3677_s21 + $0x18] sm:$0xff] }
 0x527   : > { %v1919_v32 = vmul.f32 %v1911_v19, %v1891_v28  ;;  %v1917_v40 = vmul.f32 %v1906_v24, %v1889_v29  ;;  %v1886_v42 = vmul.f32 %v1884_v59, %v3489_v34  ;;  %v1915_v37 = vmul.f32 %v1901_v47, %v1887_v58 }
 0x528   : > { %v1920_v39 = vmul.f32 %v1911_v19, %v1892_v12  ;;  %v1918_v41 = vmul.f32 %v1906_v24, %v1890_v30  ;;  %v1916_v23 = vmul.f32 %v1901_v47, %v1888_v31  ;;  %v1913_v35 = vmul.f32 %v1896_v44, %v1885_v53  ;;  %v1960_v24 = vpop.permute.xlu1 %1959  ;;  %v2056_v47 = vld [vmem:[%s3677_s21] sm:$0xff]  ;;  %v2072_v30 = vpop.permute.xlu0 %2071 }
 0x529   : > { %v3513_v43 = vadd.f32 %v1939_v56, %v1919_v32  ;;  %v3518_v36 = vadd.f32 %v1934_v27, %v1917_v40  ;;  %v1914_v46 = vmul.f32 %v1896_v44, %v1886_v42  ;;  %v3524_v34 = vadd.f32 %v1929_v38, %v1915_v37 }
 0x52a   : > { %v3515_v25 = vadd.f32 %v1939_v56, %v1920_v39  ;;  %v3521_v33 = vadd.f32 %v1934_v27, %v1918_v41  ;;  %v3527_v49 = vadd.f32 %v1929_v38, %v1916_v23  ;;  %v3530_v50 = vadd.f32 %v1924_v48, %v1913_v35  ;;  %v2058_v27 = vld [vmem:[%s3677_s21 + $0x10] sm:$0xff] }
 0x52b   : > { %2002 = vmatpush.msrb.mxu2 %v3513_v43  ;;  %v3536_v52 = vadd.f32 %v1924_v48, %v1914_v46 }
 0x52c   : > { %2031 = vmatpush.msrb.mxu3 %v3515_v25 }
 0x52d   : > { %2003 = vmatpush.msrb.mxu2 %v3518_v36 }
 0x52e   : > { %2032 = vmatpush.msrb.mxu3 %v3521_v33  ;;  %v1970_v4 = vpop.permute.xlu2 %1969 }
 0x52f   : > { %2004 = vmatpush.msrb.mxu2 %v3524_v34 }
 0x530   : > { %2033 = vmatpush.msrb.mxu3 %v3527_v49  ;;  %v2077_v53 = vpop.permute.xlu1 %2076 }
 0x531   : > { %2005 = vmatpush.msrb.mxu2 %v3530_v50 }
 0x532   : > { %2034 = vmatpush.msrb.mxu3 %v3536_v52  ;;  %2466 = vmatmul.msk.f32.vlgmr.msrb.gmra.mxu2 %vm1977_vm12, %v1949_v51 }
 0x533   : > { %2470 = vmatmul.msk.f32.vlgmr.msrb.gmra.mxu3 %vm1977_vm12, %v1949_v51 }
 0x536   : > { %v2067_v12 = vpop.permute.xlu2 %2066 }
 0x53a   : > { %2467 = vmatmul.msk.f32.gmra.mxu2 %vm1977_vm12, %v1950_v54 }
 0x53b   : > { %2471 = vmatmul.msk.f32.gmra.mxu3 %vm1977_vm12, %v1950_v54 }
 0x53e   : > { %v2082_v48 = vpop.permute.xlu2 %2081 }
 0x542   : > { %2468 = vmatmul.msk.f32.gmra.mxu2 %vm1977_vm12, %v1951_v55 }
 0x543   : > { %2472 = vmatmul.msk.f32.gmra.mxu3 %vm1977_vm12, %v1951_v55 }
 0x54a   : > { %2469 = vmatmul.msk.f32.gmra.mxu2 %vm1977_vm12, %v1952_v60 }
 0x54b   : > { %2473 = vmatmul.msk.f32.gmra.mxu3 %vm1977_vm12, %v1952_v60 }
 0x5b5   : > { %v2007_v61 = vpop.f32.mrf.mxu2 }
 0x5b6   : > { %v2036_v63 = vpop.f32.mrf.mxu3  ;;  %v2008_v21 = vadd.f32 %v2007_v61, %v1960_v24 }
 0x5b7   : > { %v2037_v13 = vadd.f32 %v2036_v63, %v1960_v24 }
 0x5b8   : > { %v2048_v26 = vmax.f32 %v2008_v21, 0.0 }
 0x5b9   : > { %v2049_v57 = vmax.f32 %v2037_v13, 0.0 }
 0x5bd   : > { %v2010_v0 = vpop.f32.mrf.mxu2 }
 0x5be   : > { %v2039_v1 = vpop.f32.mrf.mxu3  ;;  %v2011_v20 = vadd.f32 %v2010_v0, %v1965_v9 }
 0x5bf   : > { %v2040_v18 = vadd.f32 %v2039_v1, %v1965_v9 }
 0x5c0   : > { %v2050_v56 = vmax.f32 %v2011_v20, 0.0 }
 0x5c1   : > { %v2051_v10 = vmax.f32 %v2040_v18, 0.0 }
 0x5c5   : > { %v2013_v2 = vpop.f32.mrf.mxu2 }
 0x5c6   : > { %v2042_v3 = vpop.f32.mrf.mxu3  ;;  %v2014_v6 = vadd.f32 %v2013_v2, %v1970_v4 }
 0x5c7   : > { %v2043_v16 = vadd.f32 %v2042_v3, %v1970_v4 }
 0x5c8   : > { %v2052_v11 = vmax.f32 %v2014_v6, 0.0 }
 0x5c9   : > { %v2053_v17 = vmax.f32 %v2043_v16, 0.0 }
 0x5cd   : > { %v2016_v45 = vpop.f32.mrf.mxu2 }
 0x5ce   : > { %v2017_v7 = vadd.f32 %v2016_v45, %v1975_v5  ;;  %v2045_v8 = vpop.f32.mrf.mxu3 }
 0x5cf   : > { %v2046_v19 = vadd.f32 %v2045_v8, %v1975_v5 }
 0x5d0   : > { %v2054_v62 = vmax.f32 %v2017_v7, 0.0 }
 0x5d1   : > { %v2055_v14 = vmax.f32 %v2046_v19, 0.0 }
 0x5d2   : > { %2108 = vmatpush.msra.mxu0 %v2054_v62 }
 0x5d3   : > { %2137 = vmatpush.msra.mxu1 %v2055_v14 }
 0x5d4   : > { %2109 = vmatpush.msra.mxu0 %v2052_v11 }
 0x5d5   : > { %2138 = vmatpush.msra.mxu1 %v2053_v17 }
 0x5d6   : > { %2110 = vmatpush.msra.mxu0 %v2050_v56 }
 0x5d7   : > { %2139 = vmatpush.msra.mxu1 %v2051_v10 }
 0x5d8   : > { %2111 = vmatpush.msra.mxu0 %v2048_v26 }
 0x5d9   : > { %2140 = vmatpush.msra.mxu1 %v2049_v57  ;;  %2474 = vmatmul.msk.f32.vlgmr.msra.gmra.mxu0 %vm1977_vm12, %v2056_v47 }
 0x5da   : > { %2478 = vmatmul.msk.f32.vlgmr.msra.gmra.mxu1 %vm1977_vm12, %v2056_v47 }
 0x5e1   : > { %2475 = vmatmul.msk.f32.gmra.mxu0 %vm1977_vm12, %v2057_v22 }
 0x5e2   : > { %2479 = vmatmul.msk.f32.gmra.mxu1 %vm1977_vm12, %v2057_v22 }
 0x5e9   : > { %2476 = vmatmul.msk.f32.gmra.mxu0 %vm1977_vm12, %v2058_v27 }
 0x5ea   : > { %2480 = vmatmul.msk.f32.gmra.mxu1 %vm1977_vm12, %v2058_v27 }
 0x5f1   : > { %2477 = vmatmul.msk.f32.gmra.mxu0 %vm1977_vm12, %v2059_v15 }
 0x5f2   : > { %2481 = vmatmul.msk.f32.gmra.mxu1 %vm1977_vm12, %v2059_v15 }
 0x656   : > { %v2113_v28 = vpop.f32.mrf.mxu0 }
 0x657   : > { %v2142_v59 = vpop.f32.mrf.mxu1  ;;  %v2114_v41 = vadd.f32 %v2113_v28, %v2067_v12 }
 0x658   : > { %v2143_v37 = vadd.f32 %v2142_v59, %v2067_v12 }
 0x659   : > { %v2154_v38 = vadd.f32 %v2114_v41, %v3530_v50 }
 0x65a   : > { %v2155_v51 = vadd.f32 %v2143_v37, %v3536_v52 }
 0x65e   : > { %v2116_v29 = vpop.f32.mrf.mxu0 }
 0x65f   : > { %v2145_v58 = vpop.f32.mrf.mxu1  ;;  %v2117_v32 = vadd.f32 %v2116_v29, %v2072_v30 }
 0x660   : > { %v2146_v39 = vadd.f32 %v2145_v58, %v2072_v30 }
 0x661   : > { %v2156_v23 = vadd.f32 %v2117_v32, %v3524_v34 }
 0x662   : > { %v2157_v35 = vadd.f32 %v2146_v39, %v3527_v49 }
 0x663   : > { %v2170_v60 = vadd.f32 %v2156_v23, %v2154_v38 }
 0x664   : > { %v2179_v0 = vadd.f32 %v2157_v35, %v2155_v51 }
 0x666   : > { %v2119_v31 = vpop.f32.mrf.mxu0 }
 0x667   : > { %v2148_v40 = vpop.f32.mrf.mxu1  ;;  %v2120_v42 = vadd.f32 %v2119_v31, %v2077_v53 }
 0x668   : > { %v2149_v44 = vadd.f32 %v2148_v40, %v2077_v53 }
 0x669   : > { %v2158_v46 = vadd.f32 %v2120_v42, %v3518_v36 }
 0x66a   : > { %v2159_v54 = vadd.f32 %v2149_v44, %v3521_v33 }
 0x66b   : > { %v2171_v2 = vadd.f32 %v2170_v60, %v2158_v46  ;;  %v2259_v60 = vpop.permute.xlu0 %2258 }
 0x66c   : > { %v2180_v3 = vadd.f32 %v2179_v0, %v2159_v54 }
 0x66e   : > { %v2122_v55 = vpop.f32.mrf.mxu0 }
 0x66f   : > { %v2123_v61 = vadd.f32 %v2122_v55, %v2082_v48  ;;  %v2151_v63 = vpop.f32.mrf.mxu1  ;;  %v2264_v55 = vpop.permute.xlu1 %2263 }
 0x670   : > { %v2152_v1 = vadd.f32 %v2151_v63, %v2082_v48 }
 0x671   : > { %v2160_v34 = vadd.f32 %v2123_v61, %v3513_v43 }
 0x672   : > { %v2161_v49 = vadd.f32 %v2152_v1, %v3515_v25 }
 0x673   : > { %v2172_v50 = vadd.f32 %v2171_v2, %v2160_v34 }
 0x674   : > { %v2181_v5 = vadd.f32 %v2180_v3, %v2161_v49 }
 0x675   : > { %v2173_v36 = vrot.slane %v2172_v50, 4 }
 0x676   : > { %v2182_v4 = vrot.slane %v2181_v5, 4 }
 0x677   : > { %v2174_v45 = vadd.f32 %v2173_v36, %v2172_v50  ;;  %v2274_v50 = vpop.permute.xlu0 %2273 }
 0x678   : > { %v2183_v52 = vadd.f32 %v2182_v4, %v2181_v5 }
 0x679   : > { %v2175_v6 = vrot.slane %v2174_v45, 2 }
 0x67a   : > { %v2184_v33 = vrot.slane %v2183_v52, 2 }
 0x67b   : > { %v2176_v7 = vadd.f32 %v2175_v6, %v2174_v45 }
 0x67c   : > { %v2185_v8 = vadd.f32 %v2184_v33, %v2183_v52 }
 0x67d   : > { %v2177_v9 = vrot.slane %v2176_v7, 1 }
 0x67e   : > { %v2186_v16 = vrot.slane %v2185_v8, 1 }
 0x67f   : > { %v2178_v19 = vadd.f32 %v2177_v9, %v2176_v7 }
 0x680   : > { %v2187_v20 = vadd.f32 %v2186_v16, %v2185_v8 }
 0x681   : > { %v2188_v62 = vmul.f32 0.03125, %v2178_v19 }
 0x682   : > { %v2189_v24 = vmul.f32 0.03125, %v2187_v20 }
 0x683   : > { %v3585_v43 = vsub.f32 %v2154_v38, %v2188_v62  ;;  %v3587_v18 = vsub.f32 %v2156_v23, %v2188_v62  ;;  %v3589_v25 = vsub.f32 %v2158_v46, %v2188_v62  ;;  %v2196_v13 = vsub.f32 %v2160_v34, %v2188_v62  ;;  %v2269_v34 = vpop.permute.xlu2 %2268 }
 0x684   : > { %v3591_v14 = vsub.f32 %v2155_v51, %v2189_v24  ;;  %v3593_v21 = vsub.f32 %v2157_v35, %v2189_v24  ;;  %v3595_v11 = vsub.f32 %v2159_v54, %v2189_v24  ;;  %v3601_v10 = vsub.f32 %v2161_v49, %v2189_v24  ;;  %v2287_v49 = vpop.permute.xlu1 %2286 }
 0x685   : > { %v2198_v17 = vmul.f32 %v3585_v43, %v3585_v43  ;;  %v2200_v56 = vmul.f32 %v3587_v18, %v3587_v18  ;;  %v2202_v57 = vmul.f32 %v3589_v25, %v3589_v25  ;;  %v2204_v28 = vmul.f32 %v2196_v13, %v2196_v13 }
 0x686   : > { %v2199_v26 = vmul.f32 %v3591_v14, %v3591_v14  ;;  %v2201_v47 = vmul.f32 %v3593_v21, %v3593_v21  ;;  %v2203_v27 = vmul.f32 %v3595_v11, %v3595_v11  ;;  %v2205_v29 = vmul.f32 %v3601_v10, %v3601_v10 }
 0x687   : > { %v2206_v22 = vadd.f32 %v2200_v56, %v2198_v17 }
 0x688   : > { %v2215_v15 = vadd.f32 %v2201_v47, %v2199_v26  ;;  %v2297_v47 = vpop.permute.xlu0 %2296 }
 0x689   : > { %v2207_v59 = vadd.f32 %v2206_v22, %v2202_v57 }
 0x68a   : > { %v2216_v58 = vadd.f32 %v2215_v15, %v2203_v27 }
 0x68b   : > { %v2208_v12 = vadd.f32 %v2207_v59, %v2204_v28  ;;  %v2292_v20 = vpop.permute.xlu2 %2291 }
 0x68c   : > { %v2217_v30 = vadd.f32 %v2216_v58, %v2205_v29  ;;  %v2302_v26 = vpop.permute.xlu1 %2301 }
 0x68d   : > { %v2209_v31 = vrot.slane %v2208_v12, 4 }
 0x68e   : > { %v2218_v32 = vrot.slane %v2217_v30, 4 }
 0x68f   : > { %v2210_v40 = vadd.f32 %v2209_v31, %v2208_v12 }
 0x690   : > { %v2219_v53 = vadd.f32 %v2218_v32, %v2217_v30 }
 0x691   : > { %v2211_v39 = vrot.slane %v2210_v40, 2 }
 0x692   : > { %v2220_v41 = vrot.slane %v2219_v53, 2 }
 0x693   : > { %v2212_v42 = vadd.f32 %v2211_v39, %v2210_v40 }
 0x694   : > { %v2221_v37 = vadd.f32 %v2220_v41, %v2219_v53 }
 0x695   : > { %v2213_v44 = vrot.slane %v2212_v42, 1 }
 0x696   : > { %v2222_v23 = vrot.slane %v2221_v37, 1 }
 0x697   : > { %v2214_v35 = vadd.f32 %v2213_v44, %v2212_v42 }
 0x698   : > { %v2223_v38 = vadd.f32 %v2222_v23, %v2221_v37 }
 0x699   : > { %v2224_v46 = vmul.f32 0.03125, %v2214_v35 }
 0x69a   : > { %v2225_v48 = vmul.f32 0.03125, %v2223_v38 }
 0x69b   : > { %v2226_v51 = vadd.f32 1e-05, %v2224_v46 }
 0x69c   : > { %v2227_v54 = vadd.f32 1e-05, %v2225_v48 }
 0x69d   : > { %2554 = vrsqrt.f32 %v2226_v51  ;;  %vm2234_vm0 = vweird.f32 %v2226_v51 }
 0x69e   : > { %2556 = vrsqrt.f32 %v2227_v54  ;;  %vm2244_vm7 = vweird.f32 %v2227_v54 }
 0x6a3   : > { %v2555_v61 = vpop.eup %2554 }
 0x6a4   : > { %v2557_v63 = vpop.eup %2556  ;;  %v2229_v0 = vmul.f32 %v2555_v61, %v2226_v51  ;;  %vm2235_vm11 = vweird.f32 %v2555_v61 }
 0x6a5   : > { %v2239_v1 = vmul.f32 %v2557_v63, %v2227_v54  ;;  %vm2245_vm1 = vweird.f32 %v2557_v63  ;;  %vm2236_vm6 = vmor %vm2234_vm0, %vm2235_vm11 }
 0x6a6   : > { %v2230_v2 = vmul.f32 %v2555_v61, %v2229_v0  ;;  %vm2246_vm13 = vmor %vm2244_vm7, %vm2245_vm1 }
 0x6a7   : > { %v2240_v3 = vmul.f32 %v2557_v63, %v2239_v1 }
 0x6a8   : > { %v2231_v5 = vmul.f32 0.5, %v2230_v2 }
 0x6a9   : > { %v2241_v36 = vmul.f32 0.5, %v2240_v3 }
 0x6aa   : > { %v2232_v4 = vsub.f32 1.5, %v2231_v5 }
 0x6ab   : > { %v2242_v45 = vsub.f32 1.5, %v2241_v36 }
 0x6ac   : > { %v2233_v52 = vmul.f32 %v2555_v61, %v2232_v4 }
 0x6ad   : > { %v2243_v6 = vmul.f32 %v2557_v63, %v2242_v45 }
 0x6ae   : > { %v2237_v33 = vsel %vm2236_vm6, %v2555_v61, %v2233_v52 }
 0x6af   : > { %v2248_v7 = vmul.f32 %v2237_v33, %v3585_v43  ;;  %v2250_v8 = vmul.f32 %v2237_v33, %v3587_v18  ;;  %v2252_v9 = vmul.f32 %v2237_v33, %v3589_v25  ;;  %v2254_v16 = vmul.f32 %v2237_v33, %v2196_v13 }
 0x6b0   : > { %v2247_v19 = vsel %vm2246_vm13, %v2557_v63, %v2243_v6 }
 0x6b1   : > { %v2276_v62 = vmul.f32 %v2259_v60, %v2248_v7  ;;  %v2278_v24 = vmul.f32 %v2264_v55, %v2250_v8  ;;  %v2280_v17 = vmul.f32 %v2269_v34, %v2252_v9  ;;  %v2282_v56 = vmul.f32 %v2274_v50, %v2254_v16 }
 0x6b2   : > { %v2249_v57 = vmul.f32 %v2247_v19, %v3591_v14  ;;  %v2251_v22 = vmul.f32 %v2247_v19, %v3593_v21  ;;  %v2253_v43 = vmul.f32 %v2247_v19, %v3595_v11  ;;  %v2255_v18 = vmul.f32 %v2247_v19, %v3601_v10 }
 0x6b3   : > { %v2304_v25 = vadd.f32 %v2287_v49, %v2276_v62  ;;  %v2306_v13 = vadd.f32 %v2292_v20, %v2278_v24  ;;  %v2308_v27 = vadd.f32 %v2297_v47, %v2280_v17  ;;  %v2310_v15 = vadd.f32 %v2302_v26, %v2282_v56 }
 0x6b4   : > { %v2277_v28 = vmul.f32 %v2259_v60, %v2249_v57  ;;  %v2279_v59 = vmul.f32 %v2264_v55, %v2251_v22  ;;  %v2281_v29 = vmul.f32 %v2269_v34, %v2253_v43  ;;  %v2283_v58 = vmul.f32 %v2274_v50, %v2255_v18 }
 0x6b5   : > { %2312 = vst [vmem:[%s770_s4] sm:$0xff] %v2304_v25 }
 0x6b6   : > { %2314 = vst [vmem:[%s770_s4 + $0x10] sm:$0xff] %v2306_v13  ;;  %v2305_v14 = vadd.f32 %v2287_v49, %v2277_v28  ;;  %v2307_v21 = vadd.f32 %v2292_v20, %v2279_v59  ;;  %v2309_v11 = vadd.f32 %v2297_v47, %v2281_v29  ;;  %v2311_v10 = vadd.f32 %v2302_v26, %v2283_v58 }
 0x6b7   : > { %2316 = vst [vmem:[%s770_s4 + $0x20] sm:$0xff] %v2308_v27 }
 0x6b8   : > { %2318 = vst [vmem:[%s770_s4 + $0x30] sm:$0xff] %v2310_v15 }
 0x6b9   : > { %2313 = vst [vmem:[%s770_s4 + $0x8] sm:$0xff] %v2305_v14 }
 0x6ba   : > { %2315 = vst [vmem:[%s770_s4 + $0x18] sm:$0xff] %v2307_v21 }
 0x6bb   : > { %2317 = vst [vmem:[%s770_s4 + $0x28] sm:$0xff] %v2309_v11 }
 0x6bc   : > { %2319 = vst [vmem:[%s770_s4 + $0x38] sm:$0xff] %v2311_v10 }
 0x6bd   : > { %2585 = shalt.err (!%p2582_p3)
}
 0x6be   : > { %s2627_s6 = smov 256   ;;  %s2628_s4 = smov 16  }
 0x6bf   : > { %2489 = dma.vmem_to_hbm [thread:$0]  (%p2797_p5), %s2334_s8, 1024, %s2336_s7, %s2321_s25, %s2627_s6, %s2627_s6, %s2628_s4  }
 0x6c0 PF: > { %s3763_s12 = sld [smem:[#allocation7_spill]] }
 0x6c1   : > { %s3764_s13 = sld [smem:[#allocation5_spill]] }
 0x6c6   : > { %p2495_p4 = scmp.ge.s32.totalorder %s3763_s12, 2 }
 0x6c7   : > { %s2350_s29 = sand.u32 1, %s3764_s13  }
 0x6c8   : > { %p2492_p7 = pnand %p2495_p4, %p2801_p6  ;;  %s2351_s10 = scalar_lea.sflag [#allocation3], %s2350_s29 }
 0x6ca   : > { %p2493_p8 = pneg %p2492_p7 }
 0x6cc   : > { %2603 = dma.done.wait (%p2493_p8), %s2351_s10, 1024  }
 0x6cd   : > { %2605 = vsyncadd (%p2493_p8), %s2351_s10, 4294966272  ;;  %s3766_s30 = sld [smem:[#allocation9_spill]]  ;;  %s3769_s29 = smov %s2612_s2 }
 0x6ce   : > { %s3767_s11 = sld [smem:[#allocation6_spill]] }
 0x6cf   : > { %s3768_s6 = sld [smem:[#allocation10_spill]] }
 0x6d3   : > { %p35_p9 = scmp.ge.s32.totalorder %s3766_s30, 4  }
 0x6d4   : > { %s3770_s2 = smov %s3767_s11 }
 0x6d5   :  { %37 = sbr.rel (!%p35_p9) target bundleno = 20 (0x14), region = 158 }
 0x6da   :  { %2357 = vsyncpa [#allocation3], 1 }
 0x6db   :  { %2359 = vsyncpa [#allocation3 + $0x1], 1 }

</bundles_post_ra>
